<compile_context>
chip_gen: v6e
topology: v6e:2x2x1
jax: 0.10.0
libtpu: 0.0.40
codegen_flags: <defaults>
</compile_context>

<pallas_src>
import functools

import numpy as np
import jax
import jax.numpy as jnp
from jax import lax
from jax.experimental import pallas as pl
from jax.experimental.pallas import tpu as pltpu

HIDDEN = 8              # synthetic generator hidden width
CPAD = 8                # channels padded to one f32 sublane tile
KTAPS = 9               # 3x3 taps
KCOLS = KTAPS * CPAD    # 72: contraction dim of every conv matmul


# ------------------------------ host-side helpers ---------------------------- #

def _tap_offsets_and_masks(H, W, b_tile):
    """Static 3x3 tap offsets + precomputed border masks.

    Returns `offs` (9 python ints) and a (16, b_tile*H*W) f32 array whose row k
    is the validity mask of tap k tiled per folded image (rows 9..15 padding).
    The masks zero both the zero-padding border taps and the lane wraparound
    across folded images.
    """
    hw = H * W
    p = np.arange(hw)
    py, px = p // W, p % W
    offs, rows = [], []
    for oy in (-1, 0, 1):
        for ox in (-1, 0, 1):
            offs.append(oy * W + ox)
            rows.append(((py + oy >= 0) & (py + oy < H) &
                         (px + ox >= 0) & (px + ox < W)).astype(np.float32))
    m = np.tile(np.stack(rows, 0), (1, b_tile))                    # (9, b_tile*hw)
    m = np.concatenate([m, np.zeros((16 - KTAPS, m.shape[1]), np.float32)], 0)
    return tuple(offs), jnp.asarray(m)


# --------------------------------- kernel ------------------------------------ #

def _inpaint_kernel(x_ref, m9_ref, w_ref, b_ref, first_ref, second_ref,
                    patches_ref, *, offs):
    lhw = x_ref.shape[-1]
    x = x_ref[0]                      # (8, LHW) f32: rows 0-2 image, 3 mask, 4-7 zero
    m9 = m9_ref[...]                  # (16, LHW) f32 tap border masks (rows 0-8)
    m = x[3:4, :]                     # (1, LHW) mask
    one_minus_m = 1.0 - m

    # Per-row selectors (sublane broadcast) instead of misaligned concatenates.
    row = lax.broadcasted_iota(jnp.int32, (CPAD, 1), 0)
    sel_img = (row < 3).astype(jnp.float32)     # rows 0-2 (image channels)
    sel_msk = (row == 3).astype(jnp.float32)    # row 3    (mask channel)

    def conv3x3(x8, li, act):
        """3x3 conv (stride 1, zero pad 1) as ONE bf16 MXU matmul."""
        # Build the 9 shifted+masked taps as aligned 8-sublane slabs in VMEM.
        for k, off in enumerate(offs):
            shifted = x8 if off == 0 else pltpu.roll(x8, (-off) % lhw, axis=1)
            patches_ref[pl.ds(k * CPAD, CPAD), :] = shifted * m9[k:k + 1, :]
        w = w_ref[li]                                      # (8, 72) bf16
        b = b_ref[li]                                      # (8, 1)  f32
        acc = jnp.dot(w, patches_ref[...].astype(jnp.bfloat16),
                      preferred_element_type=jnp.float32) + b
        if act == "relu":
            return jnp.maximum(acc, 0.0)
        return jnp.tanh(acc)

    # stage 1: masked fill -> coarse network
    x1 = sel_img * (x * one_minus_m + m) + sel_msk * m
    h1 = conv3x3(x1, 0, "relu")
    first = conv3x3(h1, 1, "tanh")          # rows 3-7 exactly zero (padded w/b)

    # stage 2: compose coarse result with known pixels -> refine network
    x2 = sel_img * (first * m + x * one_minus_m) + sel_msk * m
    h2 = conv3x3(x2, 2, "relu")
    second = conv3x3(h2, 3, "tanh")

    first_ref[0] = first.astype(first_ref.dtype)
    second_ref[0] = second.astype(second_ref.dtype)


# -------------------------------- wrapper ------------------------------------ #

def inpainting_model_forward(params, images, masks):
    """Mirrors inpaintingModel.forward: returns (first_output, second_output)."""
    n, c, H, W = images.shape
    hw = H * W

    # Fold images into the lane axis of each matmul.  Keep the grid length a
    # multiple of 2 so both v7x TensorCores stay busy; on single-TC v5e/v6e
    # this also means only 2 serial grid steps of fixed overhead.
    if n % 2 == 0:
        steps, b_tile = 2, n // 2
    else:
        steps, b_tile = n, 1
    lhw = b_tile * hw

    # Fuse image + mask into one 8-sublane slab and fold b_tile images into lanes.
    img = images.reshape(n, c, hw).astype(jnp.float32)
    msk = masks.reshape(n, 1, hw).astype(jnp.float32)
    pad = jnp.zeros((n, CPAD - c - 1, hw), jnp.float32)
    x = jnp.concatenate([img, msk, pad], axis=1)                    # (n, 8, hw)
    x = x.reshape(steps, b_tile, CPAD, hw).transpose(0, 2, 1, 3)
    x = x.reshape(steps, CPAD, lhw)                                 # (steps, 8, LHW)

    offs, m9 = _tap_offsets_and_masks(H, W, b_tile)
    kernel = functools.partial(_inpaint_kernel, offs=offs)

    first, second = pl.pallas_call(
        kernel,
        out_shape=(jax.ShapeDtypeStruct((steps, CPAD, lhw), jnp.float32),
                   jax.ShapeDtypeStruct((steps, CPAD, lhw), jnp.float32)),
        grid=(steps,),
        in_specs=[
            pl.BlockSpec((1, CPAD, lhw), lambda i: (i, 0, 0)),       # fused image+mask
            pl.BlockSpec((16, lhw), lambda i: (0, 0)),               # tap border masks
            pl.BlockSpec((4, CPAD, KCOLS), lambda i: (0, 0, 0)),     # packed weights
            pl.BlockSpec((4, CPAD, 1), lambda i: (0, 0, 0)),         # packed biases
        ],
        out_specs=(pl.BlockSpec((1, CPAD, lhw), lambda i: (i, 0, 0)),
                   pl.BlockSpec((1, CPAD, lhw), lambda i: (i, 0, 0))),
        scratch_shapes=[pltpu.VMEM((KCOLS, lhw), jnp.float32)],      # im2col patches
        compiler_params=pltpu.CompilerParams(dimension_semantics=("parallel",)),
    )(x, m9, params["W"], params["B"])

    def unpack(y):
        y = y.reshape(steps, CPAD, b_tile, hw).transpose(0, 2, 1, 3)
        return y.reshape(n, CPAD, H, W)[:, :3]

    return unpack(first), unpack(second)


# ---------------------- params (PyTorch layout + convert) -------------------- #

def init_torch_params(key, hidden=HIDDEN):
    """Deterministic synthetic generator params in PyTorch (OIHW) layout."""
    ks = jax.random.split(key, 8)

    def conv_w(k, cout, cin):
        scale = (2.0 / (9 * cin)) ** 0.5
        return jax.random.normal(k, (cout, cin, 3, 3), jnp.float32) * scale

    def bias(k, cout):
        return 0.1 * jax.random.normal(k, (cout,), jnp.float32)

    return {
        "w1": conv_w(ks[0], hidden, 4), "b1": bias(ks[1], hidden),
        "w2": conv_w(ks[2], 3, hidden), "b2": bias(ks[3], 3),
        "w3": conv_w(ks[4], hidden, 4), "b3": bias(ks[5], hidden),
        "w4": conv_w(ks[6], 3, hidden), "b4": bias(ks[7], 3),
    }


def convert_params(tp):
    """OIHW -> one packed bf16 weight tensor (4,8,72) + one f32 bias (4,8,1).

    W[l] columns are tap-major (tap*8 + padded input channel) matching the
    kernel patch layout; padded rows/columns are zeroed so they contribute
    nothing to the accumulation.
    """
    ws, bs = [], []
    for i in (1, 2, 3, 4):
        w = tp[f"w{i}"]                                   # (cout, cin, 3, 3)
        cout, cin = w.shape[0], w.shape[1]
        w = jnp.transpose(w, (0, 2, 3, 1))                # (cout, 3, 3, cin)
        w = jnp.pad(w, ((0, CPAD - cout), (0, 0), (0, 0), (0, CPAD - cin)))
        ws.append(w.reshape(CPAD, KCOLS))
        bs.append(jnp.pad(tp[f"b{i}"], (0, CPAD - cout)).reshape(CPAD, 1))
    return {"W": jnp.stack(ws).astype(jnp.bfloat16),
            "B": jnp.stack(bs).astype(jnp.float32)}


# --------------------------- pure-JAX reference ------------------------------ #

def _ref_forward(tp, images, masks):
    def conv(x, w, b):
        y = lax.conv_general_dilated(
            x, w, window_strides=(1, 1), padding=((1, 1), (1, 1)),
            dimension_numbers=("NCHW", "OIHW", "NCHW"))
        return y + b.reshape(1, -1, 1, 1)

    m = masks
    masked = images * (1.0 - m) + m
    x1 = jnp.concatenate([masked, m], axis=1)
    h1 = jax.nn.relu(conv(x1, tp["w1"], tp["b1"]))
    first = jnp.tanh(conv(h1, tp["w2"], tp["b2"]))
    composed = first * m + images * (1.0 - m)
    x2 = jnp.concatenate([composed, m], axis=1)
    h2 = jax.nn.relu(conv(x2, tp["w3"], tp["b3"]))
    second = jnp.tanh(conv(h2, tp["w4"], tp["b4"]))
    return first, second


if __name__ == "__main__":
    key = jax.random.PRNGKey(0)
    k_img, k_mask, k_w = jax.random.split(key, 3)

    N, H, W = 4, 16, 16          # even batch -> grid=(2,), B_TILE=2 (lane extent 512)
    images = jax.random.uniform(k_img, (N, 3, H, W), dtype=jnp.float32)
    masks = (jax.random.uniform(k_mask, (N, 1, H, W)) > 0.5).astype(jnp.float32)

    torch_params = init_torch_params(k_w, hidden=HIDDEN)
    kernel_params = convert_params(torch_params)

    first, second = jax.jit(inpainting_model_forward)(kernel_params, images, masks)
    jax.block_until_ready((first, second))

    assert first.shape == (N, 3, H, W), first.shape
    assert second.shape == (N, 3, H, W), second.shape
    assert first.dtype == jnp.float32 and second.dtype == jnp.float32

    # Correctness check against a plain-JAX f32 reference of the same forward.
    # bf16 MXU operands dominate the error (~1e-2); a layout/ordering bug would
    # show up as an O(1) discrepancy, so this tolerance still catches it.
    ref_first, ref_second = _ref_forward(torch_params, images, masks)
    err1 = float(jnp.max(jnp.abs(first - ref_first)))
    err2 = float(jnp.max(jnp.abs(second - ref_second)))
    assert err1 < 5e-2, f"first_output max abs err {err1}"
    assert err2 < 5e-2, f"second_output max abs err {err2}"

    print("KERNEL_OK")
</pallas_src>

<mosaic_0001>
module attributes {stable_mosaic.version = 11 : i64} {
  func.func @_inpaint_kernel(%arg0: i32, %arg1: memref<1x8x512xf32, #tpu.memory_space<vmem>>, %arg2: memref<16x512xf32, #tpu.memory_space<vmem>>, %arg3: memref<4x8x72xbf16, #tpu.memory_space<vmem>>, %arg4: memref<4x8x1xf32, #tpu.memory_space<vmem>>, %arg5: memref<1x8x512xf32, #tpu.memory_space<vmem>>, %arg6: memref<1x8x512xf32, #tpu.memory_space<vmem>>, %arg7: memref<72x512xf32, #tpu.memory_space<vmem>>) attributes {dimension_semantics = [#tpu.dimension_semantics<parallel>], iteration_bounds = array<i64: 2>, scalar_prefetch = 0 : i64, scratch_operands = 1 : i64, tpu.core_type = #tpu.core_type<tc>, window_params = [{transform_indices = @transform_0, window_bounds = array<i64: 1, 8, 512>}, {pipeline_mode = #tpu.pipeline_mode<synchronous>, transform_indices = @transform_1, window_bounds = array<i64: 16, 512>}, {pipeline_mode = #tpu.pipeline_mode<synchronous>, transform_indices = @transform_2, window_bounds = array<i64: 4, 8, 72>}, {pipeline_mode = #tpu.pipeline_mode<synchronous>, transform_indices = @transform_3, window_bounds = array<i64: 4, 8, 1>}, {transform_indices = @transform_4, window_bounds = array<i64: 1, 8, 512>}, {transform_indices = @transform_5, window_bounds = array<i64: 1, 8, 512>}]} {
    %c0 = arith.constant 0 : index
    %c0_0 = arith.constant 0 : index
    %c0_1 = arith.constant 0 : index
    %0 = vector.load %arg1[%c0, %c0_0, %c0_1] : memref<1x8x512xf32, #tpu.memory_space<vmem>>, vector<1x8x512xf32>
    %1 = vector.shape_cast %0 : vector<1x8x512xf32> to vector<8x512xf32>
    %c0_2 = arith.constant 0 : index
    %c0_3 = arith.constant 0 : index
    %2 = vector.load %arg2[%c0_2, %c0_3] : memref<16x512xf32, #tpu.memory_space<vmem>>, vector<16x512xf32>
    %3 = vector.extract_strided_slice %1 {offsets = [3, 0], sizes = [1, 512], strides = [1, 1]} : vector<8x512xf32> to vector<1x512xf32>
    %cst = arith.constant 1.000000e+00 : f32
    %4 = vector.broadcast %cst : f32 to vector<1x512xf32>
    %5 = arith.subf %4, %3 : vector<1x512xf32>
    %6 = tpu.iota {dimensions = array<i32: 0>} : vector<8x1xi32>
    %c3_i32 = arith.constant 3 : i32
    %7 = vector.broadcast %c3_i32 : i32 to vector<8x1xi32>
    %8 = arith.cmpi slt, %6, %7 : vector<8x1xi32>
    %9 = arith.extui %8 : vector<8x1xi1> to vector<8x1xi32>
    %10 = arith.sitofp %9 : vector<8x1xi32> to vector<8x1xf32>
    %c3_i32_4 = arith.constant 3 : i32
    %11 = vector.broadcast %c3_i32_4 : i32 to vector<8x1xi32>
    %12 = arith.cmpi eq, %6, %11 : vector<8x1xi32>
    %13 = arith.extui %12 : vector<8x1xi1> to vector<8x1xi32>
    %14 = arith.sitofp %13 : vector<8x1xi32> to vector<8x1xf32>
    %15 = vector.broadcast %5 : vector<1x512xf32> to vector<8x512xf32>
    %16 = arith.mulf %1, %15 : vector<8x512xf32>
    %17 = vector.broadcast %3 : vector<1x512xf32> to vector<8x512xf32>
    %18 = arith.addf %16, %17 : vector<8x512xf32>
    %19 = vector.broadcast %10 : vector<8x1xf32> to vector<8x512xf32>
    %20 = arith.mulf %19, %18 : vector<8x512xf32>
    %21 = vector.broadcast %14 : vector<8x1xf32> to vector<8x512xf32>
    %22 = vector.broadcast %3 : vector<1x512xf32> to vector<8x512xf32>
    %23 = arith.mulf %21, %22 : vector<8x512xf32>
    %24 = arith.addf %20, %23 : vector<8x512xf32>
    %c17_i32 = arith.constant 17 : i32
    %25 = tpu.dynamic_rotate %24 by %c17_i32 dim 1 : vector<8x512xf32>, i32 -> vector<8x512xf32>
    %26 = vector.extract_strided_slice %2 {offsets = [0, 0], sizes = [1, 512], strides = [1, 1]} : vector<16x512xf32> to vector<1x512xf32>
    %27 = vector.broadcast %26 : vector<1x512xf32> to vector<8x512xf32>
    %28 = arith.mulf %25, %27 : vector<8x512xf32>
    %c0_5 = arith.constant 0 : index
    %c0_6 = arith.constant 0 : index
    %29 = vector.load %arg7[%c0_5, %c0_6] : memref<72x512xf32, #tpu.memory_space<vmem>>, vector<8x512xf32>
    tpu.vector_store %arg7[%c0_5, %c0_6], %28 {strides = array<i32>} : memref<72x512xf32, #tpu.memory_space<vmem>>, vector<8x512xf32>,
    %c16_i32 = arith.constant 16 : i32
    %30 = tpu.dynamic_rotate %24 by %c16_i32 dim 1 : vector<8x512xf32>, i32 -> vector<8x512xf32>
    %31 = vector.extract_strided_slice %2 {offsets = [1, 0], sizes = [1, 512], strides = [1, 1]} : vector<16x512xf32> to vector<1x512xf32>
    %32 = vector.broadcast %31 : vector<1x512xf32> to vector<8x512xf32>
    %33 = arith.mulf %30, %32 : vector<8x512xf32>
    %c8 = arith.constant 8 : index
    %c0_7 = arith.constant 0 : index
    %34 = vector.load %arg7[%c8, %c0_7] : memref<72x512xf32, #tpu.memory_space<vmem>>, vector<8x512xf32>
    tpu.vector_store %arg7[%c8, %c0_7], %33 {strides = array<i32>} : memref<72x512xf32, #tpu.memory_space<vmem>>, vector<8x512xf32>,
    %c15_i32 = arith.constant 15 : i32
    %35 = tpu.dynamic_rotate %24 by %c15_i32 dim 1 : vector<8x512xf32>, i32 -> vector<8x512xf32>
    %36 = vector.extract_strided_slice %2 {offsets = [2, 0], sizes = [1, 512], strides = [1, 1]} : vector<16x512xf32> to vector<1x512xf32>
    %37 = vector.broadcast %36 : vector<1x512xf32> to vector<8x512xf32>
    %38 = arith.mulf %35, %37 : vector<8x512xf32>
    %c16 = arith.constant 16 : index
    %c0_8 = arith.constant 0 : index
    %39 = vector.load %arg7[%c16, %c0_8] : memref<72x512xf32, #tpu.memory_space<vmem>>, vector<8x512xf32>
    tpu.vector_store %arg7[%c16, %c0_8], %38 {strides = array<i32>} : memref<72x512xf32, #tpu.memory_space<vmem>>, vector<8x512xf32>,
    %c1_i32 = arith.constant 1 : i32
    %40 = tpu.dynamic_rotate %24 by %c1_i32 dim 1 : vector<8x512xf32>, i32 -> vector<8x512xf32>
    %41 = vector.extract_strided_slice %2 {offsets = [3, 0], sizes = [1, 512], strides = [1, 1]} : vector<16x512xf32> to vector<1x512xf32>
    %42 = vector.broadcast %41 : vector<1x512xf32> to vector<8x512xf32>
    %43 = arith.mulf %40, %42 : vector<8x512xf32>
    %c24 = arith.constant 24 : index
    %c0_9 = arith.constant 0 : index
    %44 = vector.load %arg7[%c24, %c0_9] : memref<72x512xf32, #tpu.memory_space<vmem>>, vector<8x512xf32>
    tpu.vector_store %arg7[%c24, %c0_9], %43 {strides = array<i32>} : memref<72x512xf32, #tpu.memory_space<vmem>>, vector<8x512xf32>,
    %45 = vector.extract_strided_slice %2 {offsets = [4, 0], sizes = [1, 512], strides = [1, 1]} : vector<16x512xf32> to vector<1x512xf32>
    %46 = vector.broadcast %45 : vector<1x512xf32> to vector<8x512xf32>
    %47 = arith.mulf %24, %46 : vector<8x512xf32>
    %c32 = arith.constant 32 : index
    %c0_10 = arith.constant 0 : index
    %48 = vector.load %arg7[%c32, %c0_10] : memref<72x512xf32, #tpu.memory_space<vmem>>, vector<8x512xf32>
    tpu.vector_store %arg7[%c32, %c0_10], %47 {strides = array<i32>} : memref<72x512xf32, #tpu.memory_space<vmem>>, vector<8x512xf32>,
    %c511_i32 = arith.constant 511 : i32
    %49 = tpu.dynamic_rotate %24 by %c511_i32 dim 1 : vector<8x512xf32>, i32 -> vector<8x512xf32>
    %50 = vector.extract_strided_slice %2 {offsets = [5, 0], sizes = [1, 512], strides = [1, 1]} : vector<16x512xf32> to vector<1x512xf32>
    %51 = vector.broadcast %50 : vector<1x512xf32> to vector<8x512xf32>
    %52 = arith.mulf %49, %51 : vector<8x512xf32>
    %c40 = arith.constant 40 : index
    %c0_11 = arith.constant 0 : index
    %53 = vector.load %arg7[%c40, %c0_11] : memref<72x512xf32, #tpu.memory_space<vmem>>, vector<8x512xf32>
    tpu.vector_store %arg7[%c40, %c0_11], %52 {strides = array<i32>} : memref<72x512xf32, #tpu.memory_space<vmem>>, vector<8x512xf32>,
    %c497_i32 = arith.constant 497 : i32
    %54 = tpu.dynamic_rotate %24 by %c497_i32 dim 1 : vector<8x512xf32>, i32 -> vector<8x512xf32>
    %55 = vector.extract_strided_slice %2 {offsets = [6, 0], sizes = [1, 512], strides = [1, 1]} : vector<16x512xf32> to vector<1x512xf32>
    %56 = vector.broadcast %55 : vector<1x512xf32> to vector<8x512xf32>
    %57 = arith.mulf %54, %56 : vector<8x512xf32>
    %c48 = arith.constant 48 : index
    %c0_12 = arith.constant 0 : index
    %58 = vector.load %arg7[%c48, %c0_12] : memref<72x512xf32, #tpu.memory_space<vmem>>, vector<8x512xf32>
    tpu.vector_store %arg7[%c48, %c0_12], %57 {strides = array<i32>} : memref<72x512xf32, #tpu.memory_space<vmem>>, vector<8x512xf32>,
    %c496_i32 = arith.constant 496 : i32
    %59 = tpu.dynamic_rotate %24 by %c496_i32 dim 1 : vector<8x512xf32>, i32 -> vector<8x512xf32>
    %60 = vector.extract_strided_slice %2 {offsets = [7, 0], sizes = [1, 512], strides = [1, 1]} : vector<16x512xf32> to vector<1x512xf32>
    %61 = vector.broadcast %60 : vector<1x512xf32> to vector<8x512xf32>
    %62 = arith.mulf %59, %61 : vector<8x512xf32>
    %c56 = arith.constant 56 : index
    %c0_13 = arith.constant 0 : index
    %63 = vector.load %arg7[%c56, %c0_13] : memref<72x512xf32, #tpu.memory_space<vmem>>, vector<8x512xf32>
    tpu.vector_store %arg7[%c56, %c0_13], %62 {strides = array<i32>} : memref<72x512xf32, #tpu.memory_space<vmem>>, vector<8x512xf32>,
    %c495_i32 = arith.constant 495 : i32
    %64 = tpu.dynamic_rotate %24 by %c495_i32 dim 1 : vector<8x512xf32>, i32 -> vector<8x512xf32>
    %65 = vector.extract_strided_slice %2 {offsets = [8, 0], sizes = [1, 512], strides = [1, 1]} : vector<16x512xf32> to vector<1x512xf32>
    %66 = vector.broadcast %65 : vector<1x512xf32> to vector<8x512xf32>
    %67 = arith.mulf %64, %66 : vector<8x512xf32>
    %c64 = arith.constant 64 : index
    %c0_14 = arith.constant 0 : index
    %68 = vector.load %arg7[%c64, %c0_14] : memref<72x512xf32, #tpu.memory_space<vmem>>, vector<8x512xf32>
    tpu.vector_store %arg7[%c64, %c0_14], %67 {strides = array<i32>} : memref<72x512xf32, #tpu.memory_space<vmem>>, vector<8x512xf32>,
    %c0_15 = arith.constant 0 : index
    %c0_16 = arith.constant 0 : index
    %c0_17 = arith.constant 0 : index
    %69 = vector.load %arg3[%c0_15, %c0_16, %c0_17] : memref<4x8x72xbf16, #tpu.memory_space<vmem>>, vector<1x8x72xbf16>
    %70 = vector.shape_cast %69 : vector<1x8x72xbf16> to vector<8x72xbf16>
    %c0_18 = arith.constant 0 : index
    %c0_19 = arith.constant 0 : index
    %c0_20 = arith.constant 0 : index
    %71 = vector.load %arg4[%c0_18, %c0_19, %c0_20] : memref<4x8x1xf32, #tpu.memory_space<vmem>>, vector<1x8x1xf32>
    %72 = vector.shape_cast %71 : vector<1x8x1xf32> to vector<8x1xf32>
    %c0_21 = arith.constant 0 : index
    %c0_22 = arith.constant 0 : index
    %73 = vector.load %arg7[%c0_21, %c0_22] : memref<72x512xf32, #tpu.memory_space<vmem>>, vector<72x512xf32>
    %74 = arith.truncf %73 : vector<72x512xf32> to vector<72x512xbf16>
    %cst_23 = arith.constant dense<0.000000e+00> : vector<8x512xf32>
    %75 = tpu.matmul %70, %74, %cst_23 {dimension_numbers = #tpu.dot_dimension_numbers<[1], [0], [0], [1], [0, 0, 1, 1], [], []>} : vector<8x72xbf16>, vector<72x512xbf16>, vector<8x512xf32> -> vector<8x512xf32>
    %76 = vector.broadcast %72 : vector<8x1xf32> to vector<8x512xf32>
    %77 = arith.addf %75, %76 : vector<8x512xf32>
    %cst_24 = arith.constant 0.000000e+00 : f32
    %78 = vector.broadcast %cst_24 : f32 to vector<8x512xf32>
    %79 = arith.maximumf %77, %78 : vector<8x512xf32>
    %c17_i32_25 = arith.constant 17 : i32
    %80 = tpu.dynamic_rotate %79 by %c17_i32_25 dim 1 : vector<8x512xf32>, i32 -> vector<8x512xf32>
    %81 = vector.extract_strided_slice %2 {offsets = [0, 0], sizes = [1, 512], strides = [1, 1]} : vector<16x512xf32> to vector<1x512xf32>
    %82 = vector.broadcast %81 : vector<1x512xf32> to vector<8x512xf32>
    %83 = arith.mulf %80, %82 : vector<8x512xf32>
    %c0_26 = arith.constant 0 : index
    %c0_27 = arith.constant 0 : index
    %84 = vector.load %arg7[%c0_26, %c0_27] : memref<72x512xf32, #tpu.memory_space<vmem>>, vector<8x512xf32>
    tpu.vector_store %arg7[%c0_26, %c0_27], %83 {strides = array<i32>} : memref<72x512xf32, #tpu.memory_space<vmem>>, vector<8x512xf32>,
    %c16_i32_28 = arith.constant 16 : i32
    %85 = tpu.dynamic_rotate %79 by %c16_i32_28 dim 1 : vector<8x512xf32>, i32 -> vector<8x512xf32>
    %86 = vector.extract_strided_slice %2 {offsets = [1, 0], sizes = [1, 512], strides = [1, 1]} : vector<16x512xf32> to vector<1x512xf32>
    %87 = vector.broadcast %86 : vector<1x512xf32> to vector<8x512xf32>
    %88 = arith.mulf %85, %87 : vector<8x512xf32>
    %c8_29 = arith.constant 8 : index
    %c0_30 = arith.constant 0 : index
    %89 = vector.load %arg7[%c8_29, %c0_30] : memref<72x512xf32, #tpu.memory_space<vmem>>, vector<8x512xf32>
    tpu.vector_store %arg7[%c8_29, %c0_30], %88 {strides = array<i32>} : memref<72x512xf32, #tpu.memory_space<vmem>>, vector<8x512xf32>,
    %c15_i32_31 = arith.constant 15 : i32
    %90 = tpu.dynamic_rotate %79 by %c15_i32_31 dim 1 : vector<8x512xf32>, i32 -> vector<8x512xf32>
    %91 = vector.extract_strided_slice %2 {offsets = [2, 0], sizes = [1, 512], strides = [1, 1]} : vector<16x512xf32> to vector<1x512xf32>
    %92 = vector.broadcast %91 : vector<1x512xf32> to vector<8x512xf32>
    %93 = arith.mulf %90, %92 : vector<8x512xf32>
    %c16_32 = arith.constant 16 : index
    %c0_33 = arith.constant 0 : index
    %94 = vector.load %arg7[%c16_32, %c0_33] : memref<72x512xf32, #tpu.memory_space<vmem>>, vector<8x512xf32>
    tpu.vector_store %arg7[%c16_32, %c0_33], %93 {strides = array<i32>} : memref<72x512xf32, #tpu.memory_space<vmem>>, vector<8x512xf32>,
    %c1_i32_34 = arith.constant 1 : i32
    %95 = tpu.dynamic_rotate %79 by %c1_i32_34 dim 1 : vector<8x512xf32>, i32 -> vector<8x512xf32>
    %96 = vector.extract_strided_slice %2 {offsets = [3, 0], sizes = [1, 512], strides = [1, 1]} : vector<16x512xf32> to vector<1x512xf32>
    %97 = vector.broadcast %96 : vector<1x512xf32> to vector<8x512xf32>
    %98 = arith.mulf %95, %97 : vector<8x512xf32>
    %c24_35 = arith.constant 24 : index
    %c0_36 = arith.constant 0 : index
    %99 = vector.load %arg7[%c24_35, %c0_36] : memref<72x512xf32, #tpu.memory_space<vmem>>, vector<8x512xf32>
    tpu.vector_store %arg7[%c24_35, %c0_36], %98 {strides = array<i32>} : memref<72x512xf32, #tpu.memory_space<vmem>>, vector<8x512xf32>,
    %100 = vector.extract_strided_slice %2 {offsets = [4, 0], sizes = [1, 512], strides = [1, 1]} : vector<16x512xf32> to vector<1x512xf32>
    %101 = vector.broadcast %100 : vector<1x512xf32> to vector<8x512xf32>
    %102 = arith.mulf %79, %101 : vector<8x512xf32>
    %c32_37 = arith.constant 32 : index
    %c0_38 = arith.constant 0 : index
    %103 = vector.load %arg7[%c32_37, %c0_38] : memref<72x512xf32, #tpu.memory_space<vmem>>, vector<8x512xf32>
    tpu.vector_store %arg7[%c32_37, %c0_38], %102 {strides = array<i32>} : memref<72x512xf32, #tpu.memory_space<vmem>>, vector<8x512xf32>,
    %c511_i32_39 = arith.constant 511 : i32
    %104 = tpu.dynamic_rotate %79 by %c511_i32_39 dim 1 : vector<8x512xf32>, i32 -> vector<8x512xf32>
    %105 = vector.extract_strided_slice %2 {offsets = [5, 0], sizes = [1, 512], strides = [1, 1]} : vector<16x512xf32> to vector<1x512xf32>
    %106 = vector.broadcast %105 : vector<1x512xf32> to vector<8x512xf32>
    %107 = arith.mulf %104, %106 : vector<8x512xf32>
    %c40_40 = arith.constant 40 : index
    %c0_41 = arith.constant 0 : index
    %108 = vector.load %arg7[%c40_40, %c0_41] : memref<72x512xf32, #tpu.memory_space<vmem>>, vector<8x512xf32>
    tpu.vector_store %arg7[%c40_40, %c0_41], %107 {strides = array<i32>} : memref<72x512xf32, #tpu.memory_space<vmem>>, vector<8x512xf32>,
    %c497_i32_42 = arith.constant 497 : i32
    %109 = tpu.dynamic_rotate %79 by %c497_i32_42 dim 1 : vector<8x512xf32>, i32 -> vector<8x512xf32>
    %110 = vector.extract_strided_slice %2 {offsets = [6, 0], sizes = [1, 512], strides = [1, 1]} : vector<16x512xf32> to vector<1x512xf32>
    %111 = vector.broadcast %110 : vector<1x512xf32> to vector<8x512xf32>
    %112 = arith.mulf %109, %111 : vector<8x512xf32>
    %c48_43 = arith.constant 48 : index
    %c0_44 = arith.constant 0 : index
    %113 = vector.load %arg7[%c48_43, %c0_44] : memref<72x512xf32, #tpu.memory_space<vmem>>, vector<8x512xf32>
    tpu.vector_store %arg7[%c48_43, %c0_44], %112 {strides = array<i32>} : memref<72x512xf32, #tpu.memory_space<vmem>>, vector<8x512xf32>,
    %c496_i32_45 = arith.constant 496 : i32
    %114 = tpu.dynamic_rotate %79 by %c496_i32_45 dim 1 : vector<8x512xf32>, i32 -> vector<8x512xf32>
    %115 = vector.extract_strided_slice %2 {offsets = [7, 0], sizes = [1, 512], strides = [1, 1]} : vector<16x512xf32> to vector<1x512xf32>
    %116 = vector.broadcast %115 : vector<1x512xf32> to vector<8x512xf32>
    %117 = arith.mulf %114, %116 : vector<8x512xf32>
    %c56_46 = arith.constant 56 : index
    %c0_47 = arith.constant 0 : index
    %118 = vector.load %arg7[%c56_46, %c0_47] : memref<72x512xf32, #tpu.memory_space<vmem>>, vector<8x512xf32>
    tpu.vector_store %arg7[%c56_46, %c0_47], %117 {strides = array<i32>} : memref<72x512xf32, #tpu.memory_space<vmem>>, vector<8x512xf32>,
    %c495_i32_48 = arith.constant 495 : i32
    %119 = tpu.dynamic_rotate %79 by %c495_i32_48 dim 1 : vector<8x512xf32>, i32 -> vector<8x512xf32>
    %120 = vector.extract_strided_slice %2 {offsets = [8, 0], sizes = [1, 512], strides = [1, 1]} : vector<16x512xf32> to vector<1x512xf32>
    %121 = vector.broadcast %120 : vector<1x512xf32> to vector<8x512xf32>
    %122 = arith.mulf %119, %121 : vector<8x512xf32>
    %c64_49 = arith.constant 64 : index
    %c0_50 = arith.constant 0 : index
    %123 = vector.load %arg7[%c64_49, %c0_50] : memref<72x512xf32, #tpu.memory_space<vmem>>, vector<8x512xf32>
    tpu.vector_store %arg7[%c64_49, %c0_50], %122 {strides = array<i32>} : memref<72x512xf32, #tpu.memory_space<vmem>>, vector<8x512xf32>,
    %c1 = arith.constant 1 : index
    %c0_51 = arith.constant 0 : index
    %c0_52 = arith.constant 0 : index
    %124 = vector.load %arg3[%c1, %c0_51, %c0_52] : memref<4x8x72xbf16, #tpu.memory_space<vmem>>, vector<1x8x72xbf16>
    %125 = vector.shape_cast %124 : vector<1x8x72xbf16> to vector<8x72xbf16>
    %c1_53 = arith.constant 1 : index
    %c0_54 = arith.constant 0 : index
    %c0_55 = arith.constant 0 : index
    %126 = vector.load %arg4[%c1_53, %c0_54, %c0_55] : memref<4x8x1xf32, #tpu.memory_space<vmem>>, vector<1x8x1xf32>
    %127 = vector.shape_cast %126 : vector<1x8x1xf32> to vector<8x1xf32>
    %c0_56 = arith.constant 0 : index
    %c0_57 = arith.constant 0 : index
    %128 = vector.load %arg7[%c0_56, %c0_57] : memref<72x512xf32, #tpu.memory_space<vmem>>, vector<72x512xf32>
    %129 = arith.truncf %128 : vector<72x512xf32> to vector<72x512xbf16>
    %cst_58 = arith.constant dense<0.000000e+00> : vector<8x512xf32>
    %130 = tpu.matmul %125, %129, %cst_58 {dimension_numbers = #tpu.dot_dimension_numbers<[1], [0], [0], [1], [0, 0, 1, 1], [], []>} : vector<8x72xbf16>, vector<72x512xbf16>, vector<8x512xf32> -> vector<8x512xf32>
    %131 = vector.broadcast %127 : vector<8x1xf32> to vector<8x512xf32>
    %132 = arith.addf %130, %131 : vector<8x512xf32>
    %133 = math.tanh %132 : vector<8x512xf32>
    %134 = vector.broadcast %3 : vector<1x512xf32> to vector<8x512xf32>
    %135 = arith.mulf %133, %134 : vector<8x512xf32>
    %136 = vector.broadcast %5 : vector<1x512xf32> to vector<8x512xf32>
    %137 = arith.mulf %1, %136 : vector<8x512xf32>
    %138 = arith.addf %135, %137 : vector<8x512xf32>
    %139 = vector.broadcast %10 : vector<8x1xf32> to vector<8x512xf32>
    %140 = arith.mulf %139, %138 : vector<8x512xf32>
    %141 = vector.broadcast %14 : vector<8x1xf32> to vector<8x512xf32>
    %142 = vector.broadcast %3 : vector<1x512xf32> to vector<8x512xf32>
    %143 = arith.mulf %141, %142 : vector<8x512xf32>
    %144 = arith.addf %140, %143 : vector<8x512xf32>
    %c17_i32_59 = arith.constant 17 : i32
    %145 = tpu.dynamic_rotate %144 by %c17_i32_59 dim 1 : vector<8x512xf32>, i32 -> vector<8x512xf32>
    %146 = vector.extract_strided_slice %2 {offsets = [0, 0], sizes = [1, 512], strides = [1, 1]} : vector<16x512xf32> to vector<1x512xf32>
    %147 = vector.broadcast %146 : vector<1x512xf32> to vector<8x512xf32>
    %148 = arith.mulf %145, %147 : vector<8x512xf32>
    %c0_60 = arith.constant 0 : index
    %c0_61 = arith.constant 0 : index
    %149 = vector.load %arg7[%c0_60, %c0_61] : memref<72x512xf32, #tpu.memory_space<vmem>>, vector<8x512xf32>
    tpu.vector_store %arg7[%c0_60, %c0_61], %148 {strides = array<i32>} : memref<72x512xf32, #tpu.memory_space<vmem>>, vector<8x512xf32>,
    %c16_i32_62 = arith.constant 16 : i32
    %150 = tpu.dynamic_rotate %144 by %c16_i32_62 dim 1 : vector<8x512xf32>, i32 -> vector<8x512xf32>
    %151 = vector.extract_strided_slice %2 {offsets = [1, 0], sizes = [1, 512], strides = [1, 1]} : vector<16x512xf32> to vector<1x512xf32>
    %152 = vector.broadcast %151 : vector<1x512xf32> to vector<8x512xf32>
    %153 = arith.mulf %150, %152 : vector<8x512xf32>
    %c8_63 = arith.constant 8 : index
    %c0_64 = arith.constant 0 : index
    %154 = vector.load %arg7[%c8_63, %c0_64] : memref<72x512xf32, #tpu.memory_space<vmem>>, vector<8x512xf32>
    tpu.vector_store %arg7[%c8_63, %c0_64], %153 {strides = array<i32>} : memref<72x512xf32, #tpu.memory_space<vmem>>, vector<8x512xf32>,
    %c15_i32_65 = arith.constant 15 : i32
    %155 = tpu.dynamic_rotate %144 by %c15_i32_65 dim 1 : vector<8x512xf32>, i32 -> vector<8x512xf32>
    %156 = vector.extract_strided_slice %2 {offsets = [2, 0], sizes = [1, 512], strides = [1, 1]} : vector<16x512xf32> to vector<1x512xf32>
    %157 = vector.broadcast %156 : vector<1x512xf32> to vector<8x512xf32>
    %158 = arith.mulf %155, %157 : vector<8x512xf32>
    %c16_66 = arith.constant 16 : index
    %c0_67 = arith.constant 0 : index
    %159 = vector.load %arg7[%c16_66, %c0_67] : memref<72x512xf32, #tpu.memory_space<vmem>>, vector<8x512xf32>
    tpu.vector_store %arg7[%c16_66, %c0_67], %158 {strides = array<i32>} : memref<72x512xf32, #tpu.memory_space<vmem>>, vector<8x512xf32>,
    %c1_i32_68 = arith.constant 1 : i32
    %160 = tpu.dynamic_rotate %144 by %c1_i32_68 dim 1 : vector<8x512xf32>, i32 -> vector<8x512xf32>
    %161 = vector.extract_strided_slice %2 {offsets = [3, 0], sizes = [1, 512], strides = [1, 1]} : vector<16x512xf32> to vector<1x512xf32>
    %162 = vector.broadcast %161 : vector<1x512xf32> to vector<8x512xf32>
    %163 = arith.mulf %160, %162 : vector<8x512xf32>
    %c24_69 = arith.constant 24 : index
    %c0_70 = arith.constant 0 : index
    %164 = vector.load %arg7[%c24_69, %c0_70] : memref<72x512xf32, #tpu.memory_space<vmem>>, vector<8x512xf32>
    tpu.vector_store %arg7[%c24_69, %c0_70], %163 {strides = array<i32>} : memref<72x512xf32, #tpu.memory_space<vmem>>, vector<8x512xf32>,
    %165 = vector.extract_strided_slice %2 {offsets = [4, 0], sizes = [1, 512], strides = [1, 1]} : vector<16x512xf32> to vector<1x512xf32>
    %166 = vector.broadcast %165 : vector<1x512xf32> to vector<8x512xf32>
    %167 = arith.mulf %144, %166 : vector<8x512xf32>
    %c32_71 = arith.constant 32 : index
    %c0_72 = arith.constant 0 : index
    %168 = vector.load %arg7[%c32_71, %c0_72] : memref<72x512xf32, #tpu.memory_space<vmem>>, vector<8x512xf32>
    tpu.vector_store %arg7[%c32_71, %c0_72], %167 {strides = array<i32>} : memref<72x512xf32, #tpu.memory_space<vmem>>, vector<8x512xf32>,
    %c511_i32_73 = arith.constant 511 : i32
    %169 = tpu.dynamic_rotate %144 by %c511_i32_73 dim 1 : vector<8x512xf32>, i32 -> vector<8x512xf32>
    %170 = vector.extract_strided_slice %2 {offsets = [5, 0], sizes = [1, 512], strides = [1, 1]} : vector<16x512xf32> to vector<1x512xf32>
    %171 = vector.broadcast %170 : vector<1x512xf32> to vector<8x512xf32>
    %172 = arith.mulf %169, %171 : vector<8x512xf32>
    %c40_74 = arith.constant 40 : index
    %c0_75 = arith.constant 0 : index
    %173 = vector.load %arg7[%c40_74, %c0_75] : memref<72x512xf32, #tpu.memory_space<vmem>>, vector<8x512xf32>
    tpu.vector_store %arg7[%c40_74, %c0_75], %172 {strides = array<i32>} : memref<72x512xf32, #tpu.memory_space<vmem>>, vector<8x512xf32>,
    %c497_i32_76 = arith.constant 497 : i32
    %174 = tpu.dynamic_rotate %144 by %c497_i32_76 dim 1 : vector<8x512xf32>, i32 -> vector<8x512xf32>
    %175 = vector.extract_strided_slice %2 {offsets = [6, 0], sizes = [1, 512], strides = [1, 1]} : vector<16x512xf32> to vector<1x512xf32>
    %176 = vector.broadcast %175 : vector<1x512xf32> to vector<8x512xf32>
    %177 = arith.mulf %174, %176 : vector<8x512xf32>
    %c48_77 = arith.constant 48 : index
    %c0_78 = arith.constant 0 : index
    %178 = vector.load %arg7[%c48_77, %c0_78] : memref<72x512xf32, #tpu.memory_space<vmem>>, vector<8x512xf32>
    tpu.vector_store %arg7[%c48_77, %c0_78], %177 {strides = array<i32>} : memref<72x512xf32, #tpu.memory_space<vmem>>, vector<8x512xf32>,
    %c496_i32_79 = arith.constant 496 : i32
    %179 = tpu.dynamic_rotate %144 by %c496_i32_79 dim 1 : vector<8x512xf32>, i32 -> vector<8x512xf32>
    %180 = vector.extract_strided_slice %2 {offsets = [7, 0], sizes = [1, 512], strides = [1, 1]} : vector<16x512xf32> to vector<1x512xf32>
    %181 = vector.broadcast %180 : vector<1x512xf32> to vector<8x512xf32>
    %182 = arith.mulf %179, %181 : vector<8x512xf32>
    %c56_80 = arith.constant 56 : index
    %c0_81 = arith.constant 0 : index
    %183 = vector.load %arg7[%c56_80, %c0_81] : memref<72x512xf32, #tpu.memory_space<vmem>>, vector<8x512xf32>
    tpu.vector_store %arg7[%c56_80, %c0_81], %182 {strides = array<i32>} : memref<72x512xf32, #tpu.memory_space<vmem>>, vector<8x512xf32>,
    %c495_i32_82 = arith.constant 495 : i32
    %184 = tpu.dynamic_rotate %144 by %c495_i32_82 dim 1 : vector<8x512xf32>, i32 -> vector<8x512xf32>
    %185 = vector.extract_strided_slice %2 {offsets = [8, 0], sizes = [1, 512], strides = [1, 1]} : vector<16x512xf32> to vector<1x512xf32>
    %186 = vector.broadcast %185 : vector<1x512xf32> to vector<8x512xf32>
    %187 = arith.mulf %184, %186 : vector<8x512xf32>
    %c64_83 = arith.constant 64 : index
    %c0_84 = arith.constant 0 : index
    %188 = vector.load %arg7[%c64_83, %c0_84] : memref<72x512xf32, #tpu.memory_space<vmem>>, vector<8x512xf32>
    tpu.vector_store %arg7[%c64_83, %c0_84], %187 {strides = array<i32>} : memref<72x512xf32, #tpu.memory_space<vmem>>, vector<8x512xf32>,
    %c2 = arith.constant 2 : index
    %c0_85 = arith.constant 0 : index
    %c0_86 = arith.constant 0 : index
    %189 = vector.load %arg3[%c2, %c0_85, %c0_86] : memref<4x8x72xbf16, #tpu.memory_space<vmem>>, vector<1x8x72xbf16>
    %190 = vector.shape_cast %189 : vector<1x8x72xbf16> to vector<8x72xbf16>
    %c2_87 = arith.constant 2 : index
    %c0_88 = arith.constant 0 : index
    %c0_89 = arith.constant 0 : index
    %191 = vector.load %arg4[%c2_87, %c0_88, %c0_89] : memref<4x8x1xf32, #tpu.memory_space<vmem>>, vector<1x8x1xf32>
    %192 = vector.shape_cast %191 : vector<1x8x1xf32> to vector<8x1xf32>
    %c0_90 = arith.constant 0 : index
    %c0_91 = arith.constant 0 : index
    %193 = vector.load %arg7[%c0_90, %c0_91] : memref<72x512xf32, #tpu.memory_space<vmem>>, vector<72x512xf32>
    %194 = arith.truncf %193 : vector<72x512xf32> to vector<72x512xbf16>
    %cst_92 = arith.constant dense<0.000000e+00> : vector<8x512xf32>
    %195 = tpu.matmul %190, %194, %cst_92 {dimension_numbers = #tpu.dot_dimension_numbers<[1], [0], [0], [1], [0, 0, 1, 1], [], []>} : vector<8x72xbf16>, vector<72x512xbf16>, vector<8x512xf32> -> vector<8x512xf32>
    %196 = vector.broadcast %192 : vector<8x1xf32> to vector<8x512xf32>
    %197 = arith.addf %195, %196 : vector<8x512xf32>
    %cst_93 = arith.constant 0.000000e+00 : f32
    %198 = vector.broadcast %cst_93 : f32 to vector<8x512xf32>
    %199 = arith.maximumf %197, %198 : vector<8x512xf32>
    %c17_i32_94 = arith.constant 17 : i32
    %200 = tpu.dynamic_rotate %199 by %c17_i32_94 dim 1 : vector<8x512xf32>, i32 -> vector<8x512xf32>
    %201 = vector.extract_strided_slice %2 {offsets = [0, 0], sizes = [1, 512], strides = [1, 1]} : vector<16x512xf32> to vector<1x512xf32>
    %202 = vector.broadcast %201 : vector<1x512xf32> to vector<8x512xf32>
    %203 = arith.mulf %200, %202 : vector<8x512xf32>
    %c0_95 = arith.constant 0 : index
    %c0_96 = arith.constant 0 : index
    %204 = vector.load %arg7[%c0_95, %c0_96] : memref<72x512xf32, #tpu.memory_space<vmem>>, vector<8x512xf32>
    tpu.vector_store %arg7[%c0_95, %c0_96], %203 {strides = array<i32>} : memref<72x512xf32, #tpu.memory_space<vmem>>, vector<8x512xf32>,
    %c16_i32_97 = arith.constant 16 : i32
    %205 = tpu.dynamic_rotate %199 by %c16_i32_97 dim 1 : vector<8x512xf32>, i32 -> vector<8x512xf32>
    %206 = vector.extract_strided_slice %2 {offsets = [1, 0], sizes = [1, 512], strides = [1, 1]} : vector<16x512xf32> to vector<1x512xf32>
    %207 = vector.broadcast %206 : vector<1x512xf32> to vector<8x512xf32>
    %208 = arith.mulf %205, %207 : vector<8x512xf32>
    %c8_98 = arith.constant 8 : index
    %c0_99 = arith.constant 0 : index
    %209 = vector.load %arg7[%c8_98, %c0_99] : memref<72x512xf32, #tpu.memory_space<vmem>>, vector<8x512xf32>
    tpu.vector_store %arg7[%c8_98, %c0_99], %208 {strides = array<i32>} : memref<72x512xf32, #tpu.memory_space<vmem>>, vector<8x512xf32>,
    %c15_i32_100 = arith.constant 15 : i32
    %210 = tpu.dynamic_rotate %199 by %c15_i32_100 dim 1 : vector<8x512xf32>, i32 -> vector<8x512xf32>
    %211 = vector.extract_strided_slice %2 {offsets = [2, 0], sizes = [1, 512], strides = [1, 1]} : vector<16x512xf32> to vector<1x512xf32>
    %212 = vector.broadcast %211 : vector<1x512xf32> to vector<8x512xf32>
    %213 = arith.mulf %210, %212 : vector<8x512xf32>
    %c16_101 = arith.constant 16 : index
    %c0_102 = arith.constant 0 : index
    %214 = vector.load %arg7[%c16_101, %c0_102] : memref<72x512xf32, #tpu.memory_space<vmem>>, vector<8x512xf32>
    tpu.vector_store %arg7[%c16_101, %c0_102], %213 {strides = array<i32>} : memref<72x512xf32, #tpu.memory_space<vmem>>, vector<8x512xf32>,
    %c1_i32_103 = arith.constant 1 : i32
    %215 = tpu.dynamic_rotate %199 by %c1_i32_103 dim 1 : vector<8x512xf32>, i32 -> vector<8x512xf32>
    %216 = vector.extract_strided_slice %2 {offsets = [3, 0], sizes = [1, 512], strides = [1, 1]} : vector<16x512xf32> to vector<1x512xf32>
    %217 = vector.broadcast %216 : vector<1x512xf32> to vector<8x512xf32>
    %218 = arith.mulf %215, %217 : vector<8x512xf32>
    %c24_104 = arith.constant 24 : index
    %c0_105 = arith.constant 0 : index
    %219 = vector.load %arg7[%c24_104, %c0_105] : memref<72x512xf32, #tpu.memory_space<vmem>>, vector<8x512xf32>
    tpu.vector_store %arg7[%c24_104, %c0_105], %218 {strides = array<i32>} : memref<72x512xf32, #tpu.memory_space<vmem>>, vector<8x512xf32>,
    %220 = vector.extract_strided_slice %2 {offsets = [4, 0], sizes = [1, 512], strides = [1, 1]} : vector<16x512xf32> to vector<1x512xf32>
    %221 = vector.broadcast %220 : vector<1x512xf32> to vector<8x512xf32>
    %222 = arith.mulf %199, %221 : vector<8x512xf32>
    %c32_106 = arith.constant 32 : index
    %c0_107 = arith.constant 0 : index
    %223 = vector.load %arg7[%c32_106, %c0_107] : memref<72x512xf32, #tpu.memory_space<vmem>>, vector<8x512xf32>
    tpu.vector_store %arg7[%c32_106, %c0_107], %222 {strides = array<i32>} : memref<72x512xf32, #tpu.memory_space<vmem>>, vector<8x512xf32>,
    %c511_i32_108 = arith.constant 511 : i32
    %224 = tpu.dynamic_rotate %199 by %c511_i32_108 dim 1 : vector<8x512xf32>, i32 -> vector<8x512xf32>
    %225 = vector.extract_strided_slice %2 {offsets = [5, 0], sizes = [1, 512], strides = [1, 1]} : vector<16x512xf32> to vector<1x512xf32>
    %226 = vector.broadcast %225 : vector<1x512xf32> to vector<8x512xf32>
    %227 = arith.mulf %224, %226 : vector<8x512xf32>
    %c40_109 = arith.constant 40 : index
    %c0_110 = arith.constant 0 : index
    %228 = vector.load %arg7[%c40_109, %c0_110] : memref<72x512xf32, #tpu.memory_space<vmem>>, vector<8x512xf32>
    tpu.vector_store %arg7[%c40_109, %c0_110], %227 {strides = array<i32>} : memref<72x512xf32, #tpu.memory_space<vmem>>, vector<8x512xf32>,
    %c497_i32_111 = arith.constant 497 : i32
    %229 = tpu.dynamic_rotate %199 by %c497_i32_111 dim 1 : vector<8x512xf32>, i32 -> vector<8x512xf32>
    %230 = vector.extract_strided_slice %2 {offsets = [6, 0], sizes = [1, 512], strides = [1, 1]} : vector<16x512xf32> to vector<1x512xf32>
    %231 = vector.broadcast %230 : vector<1x512xf32> to vector<8x512xf32>
    %232 = arith.mulf %229, %231 : vector<8x512xf32>
    %c48_112 = arith.constant 48 : index
    %c0_113 = arith.constant 0 : index
    %233 = vector.load %arg7[%c48_112, %c0_113] : memref<72x512xf32, #tpu.memory_space<vmem>>, vector<8x512xf32>
    tpu.vector_store %arg7[%c48_112, %c0_113], %232 {strides = array<i32>} : memref<72x512xf32, #tpu.memory_space<vmem>>, vector<8x512xf32>,
    %c496_i32_114 = arith.constant 496 : i32
    %234 = tpu.dynamic_rotate %199 by %c496_i32_114 dim 1 : vector<8x512xf32>, i32 -> vector<8x512xf32>
    %235 = vector.extract_strided_slice %2 {offsets = [7, 0], sizes = [1, 512], strides = [1, 1]} : vector<16x512xf32> to vector<1x512xf32>
    %236 = vector.broadcast %235 : vector<1x512xf32> to vector<8x512xf32>
    %237 = arith.mulf %234, %236 : vector<8x512xf32>
    %c56_115 = arith.constant 56 : index
    %c0_116 = arith.constant 0 : index
    %238 = vector.load %arg7[%c56_115, %c0_116] : memref<72x512xf32, #tpu.memory_space<vmem>>, vector<8x512xf32>
    tpu.vector_store %arg7[%c56_115, %c0_116], %237 {strides = array<i32>} : memref<72x512xf32, #tpu.memory_space<vmem>>, vector<8x512xf32>,
    %c495_i32_117 = arith.constant 495 : i32
    %239 = tpu.dynamic_rotate %199 by %c495_i32_117 dim 1 : vector<8x512xf32>, i32 -> vector<8x512xf32>
    %240 = vector.extract_strided_slice %2 {offsets = [8, 0], sizes = [1, 512], strides = [1, 1]} : vector<16x512xf32> to vector<1x512xf32>
    %241 = vector.broadcast %240 : vector<1x512xf32> to vector<8x512xf32>
    %242 = arith.mulf %239, %241 : vector<8x512xf32>
    %c64_118 = arith.constant 64 : index
    %c0_119 = arith.constant 0 : index
    %243 = vector.load %arg7[%c64_118, %c0_119] : memref<72x512xf32, #tpu.memory_space<vmem>>, vector<8x512xf32>
    tpu.vector_store %arg7[%c64_118, %c0_119], %242 {strides = array<i32>} : memref<72x512xf32, #tpu.memory_space<vmem>>, vector<8x512xf32>,
    %c3 = arith.constant 3 : index
    %c0_120 = arith.constant 0 : index
    %c0_121 = arith.constant 0 : index
    %244 = vector.load %arg3[%c3, %c0_120, %c0_121] : memref<4x8x72xbf16, #tpu.memory_space<vmem>>, vector<1x8x72xbf16>
    %245 = vector.shape_cast %244 : vector<1x8x72xbf16> to vector<8x72xbf16>
    %c3_122 = arith.constant 3 : index
    %c0_123 = arith.constant 0 : index
    %c0_124 = arith.constant 0 : index
    %246 = vector.load %arg4[%c3_122, %c0_123, %c0_124] : memref<4x8x1xf32, #tpu.memory_space<vmem>>, vector<1x8x1xf32>
    %247 = vector.shape_cast %246 : vector<1x8x1xf32> to vector<8x1xf32>
    %c0_125 = arith.constant 0 : index
    %c0_126 = arith.constant 0 : index
    %248 = vector.load %arg7[%c0_125, %c0_126] : memref<72x512xf32, #tpu.memory_space<vmem>>, vector<72x512xf32>
    %249 = arith.truncf %248 : vector<72x512xf32> to vector<72x512xbf16>
    %cst_127 = arith.constant dense<0.000000e+00> : vector<8x512xf32>
    %250 = tpu.matmul %245, %249, %cst_127 {dimension_numbers = #tpu.dot_dimension_numbers<[1], [0], [0], [1], [0, 0, 1, 1], [], []>} : vector<8x72xbf16>, vector<72x512xbf16>, vector<8x512xf32> -> vector<8x512xf32>
    %251 = vector.broadcast %247 : vector<8x1xf32> to vector<8x512xf32>
    %252 = arith.addf %250, %251 : vector<8x512xf32>
    %253 = math.tanh %252 : vector<8x512xf32>
    %c0_128 = arith.constant 0 : index
    %c0_129 = arith.constant 0 : index
    %c0_130 = arith.constant 0 : index
    %254 = vector.load %arg5[%c0_128, %c0_129, %c0_130] : memref<1x8x512xf32, #tpu.memory_space<vmem>>, vector<1x8x512xf32>
    %255 = vector.shape_cast %254 : vector<1x8x512xf32> to vector<8x512xf32>
    %256 = vector.shape_cast %133 : vector<8x512xf32> to vector<1x8x512xf32>
    tpu.vector_store %arg5[%c0_128, %c0_129, %c0_130], %256 {strides = array<i32>} : memref<1x8x512xf32, #tpu.memory_space<vmem>>, vector<1x8x512xf32>,
    %c0_131 = arith.constant 0 : index
    %c0_132 = arith.constant 0 : index
    %c0_133 = arith.constant 0 : index
    %257 = vector.load %arg6[%c0_131, %c0_132, %c0_133] : memref<1x8x512xf32, #tpu.memory_space<vmem>>, vector<1x8x512xf32>
    %258 = vector.shape_cast %257 : vector<1x8x512xf32> to vector<8x512xf32>
    %259 = vector.shape_cast %253 : vector<8x512xf32> to vector<1x8x512xf32>
    tpu.vector_store %arg6[%c0_131, %c0_132, %c0_133], %259 {strides = array<i32>} : memref<1x8x512xf32, #tpu.memory_space<vmem>>, vector<1x8x512xf32>,
    return
  }
  func.func @transform_0(%arg0: i32) -> (i32, i32, i32) {
    %c0_i32 = arith.constant 0 : i32
    %c0_i32_0 = arith.constant 0 : i32
    %c0_i32_1 = arith.constant 0 : i32
    return %arg0, %c0_i32, %c0_i32_0 : i32, i32, i32
  }
  func.func @transform_1(%arg0: i32) -> (i32, i32) {
    %c0_i32 = arith.constant 0 : i32
    %c0_i32_0 = arith.constant 0 : i32
    %c0_i32_1 = arith.constant 0 : i32
    return %c0_i32, %c0_i32_0 : i32, i32
  }
  func.func @transform_2(%arg0: i32) -> (i32, i32, i32) {
    %c0_i32 = arith.constant 0 : i32
    %c0_i32_0 = arith.constant 0 : i32
    %c0_i32_1 = arith.constant 0 : i32
    %c0_i32_2 = arith.constant 0 : i32
    return %c0_i32, %c0_i32_0, %c0_i32_1 : i32, i32, i32
  }
  func.func @transform_3(%arg0: i32) -> (i32, i32, i32) {
    %c0_i32 = arith.constant 0 : i32
    %c0_i32_0 = arith.constant 0 : i32
    %c0_i32_1 = arith.constant 0 : i32
    %c0_i32_2 = arith.constant 0 : i32
    return %c0_i32, %c0_i32_0, %c0_i32_1 : i32, i32, i32
  }
  func.func @transform_4(%arg0: i32) -> (i32, i32, i32) {
    %c0_i32 = arith.constant 0 : i32
    %c0_i32_0 = arith.constant 0 : i32
    %c0_i32_1 = arith.constant 0 : i32
    return %arg0, %c0_i32, %c0_i32_0 : i32, i32, i32
  }
  func.func @transform_5(%arg0: i32) -> (i32, i32, i32) {
    %c0_i32 = arith.constant 0 : i32
    %c0_i32_0 = arith.constant 0 : i32
    %c0_i32_1 = arith.constant 0 : i32
    return %arg0, %c0_i32, %c0_i32_0 : i32, i32, i32
  }
}

</mosaic_0001>

<bundles_post_ra>
// kernel: inpainting_model_forward.1
= control target key start
LH: loop header
LB: loop body
LE: loop exit
PB: predicated region body
PF: predicated region fallthrough
CT: control target
= control target key end

     0   :  { %s2041_s18 = smov 0   ;;  %s3074_s0 = inlined_call_operand.vmem [shape: f32[2,8,512], index: 0, kind: input, shape index: {}]   ;;  %s3075_s1 = inlined_call_operand.vmem [shape: f32[16,512], index: 1, kind: input, shape index: {}]   ;;  %s3076_s2 = inlined_call_operand.vmem [shape: bf16[4,8,72], index: 2, kind: input, shape index: {}]   ;;  %s3077_s3 = inlined_call_operand.vmem [shape: f32[4,8,1], index: 3, kind: input, shape index: {}]   ;;  %s3078_s4 = inlined_call_operand.vmem [shape: f32[2,8,512], index: 4, kind: output, shape index: {0}]   ;;  %s3079_s5 = inlined_call_operand.vmem [shape: f32[2,8,512], index: 5, kind: output, shape index: {1}]  }
   0x1 LB: > { %s1917_s19 = sadd.s32 4294967295, %s1999_s18   ;;  %p1921_p0 = scmp.ge.s32.totalorder %s1999_s18, 1  ;;  %s1999_s18 = sphi %s2041_s18, %s16_s18  }
   0x2   : > { %p190_p1 = scmp.lt.s32.totalorder %s1999_s18, 3 }
   0x4   : > { %p191_p2 = pnand %p1921_p0, %p190_p1 }
   0x6   : > { %194 = sbr.rel (%p191_p2) target bundleno = 1593 (0x639), region = 36 }
   0xb   : > { %p223_p3 = scmp.lt.s32.totalorder %s1917_s19, 1  ;;  %v255_v0 = vlaneseq  ;;  %v2001_v9 = vmov 0.0   ;;  %s2002_s24 = smov 111   ;;  %v3080_v42 = vmov 0   ;;  %v638_v43 = vld [vmem:[%s3077_s3] sm:$0xff]  ;;  %v248_v45 = vld [vmem:[%s3075_s1 + $0x28] sm:$0xff] }
   0xc   : > { %s2003_s25 = smov 113   ;;  %s2004_s26 = smov 112   ;;  %749 = vmatprep.mubr.bf16.mxu0 %v3080_v42  ;;  %790 = vmatprep.mubr.bf16.mxu1 %v3080_v42  ;;  %v250_v47 = vld [vmem:[%s3075_s1 + $0x38] sm:$0xff]  ;;  %v247_v48 = vld [vmem:[%s3075_s1 + $0x20] sm:$0xff]  ;;  %v249_v49 = vld [vmem:[%s3075_s1 + $0x30] sm:$0xff]  ;;  %vm704_vm3 = vcmask 1043456  }
   0xd   : > { %s3126_s19 = smov (!%p223_p3, %s1917_s19), 1  ;;  %v2050_v1 = vshrl.u32 %v255_v0, 7  ;;  %s2005_s27 = smov 127   ;;  %1975 = vset.pattern.permute.xlu0 %v3080_v42  ;;  %1976 = vset.pattern.permute.xlu1 %v3080_v42  ;;  %v2197_v44 = vand.u32 127, %v255_v0  ;;  %vm700_vm11 = vcmask 588800  }
   0xe   : > { %s2052_s20 = sshll.u32 %s3126_s19, 5  ;;  %s2006_s28 = smov 15  }
   0xf   : > { %s227_s23 = scalar_lea.vmem %s3074_s0, %s2052_s20  ;;  %vm260_vm0 = vcmp.eq.s32.totalorder %v2050_v1, 3  ;;  %v2060_v2 = vsub.s32 3, %v2050_v1  ;;  %vm257_vm1 = vcmp.lt.s32.totalorder %v2050_v1, 3  ;;  %s2007_s29 = smov 1   ;;  %v2203_v46 = vsub.s32 0, %v2050_v1 }
  0x10   : > { %v241_v3 = vld [vmem:[%s227_s23 + $0x10] sm:$0xff]  ;;  %v239_v4 = vld [vmem:[%s227_s23] sm:$0xff]  ;;  %v242_v5 = vld [vmem:[%s227_s23 + $0x18] sm:$0xff]  ;;  %v1929_v10 = vsel %vm260_vm0, 1.0, %v2001_v9  ;;  %v2083_v23 = vsel %vm257_vm1, 1.0, %v2001_v9  ;;  %s2008_s30 = smov 17   ;;  %s232_s19 = scalar_lea.vmem %s3078_s4, %s2052_s20 }
  0x11   : > { %v253_v6 = vsub.f32 1.0, %v241_v3  ;;  %v251_v7 = vsub.f32 1.0, %v239_v4  ;;  %v240_v8 = vld [vmem:[%s227_s23 + $0x8] sm:$0xff]  ;;  %v254_v11 = vsub.f32 1.0, %v242_v5  ;;  %v2065_v14 = vrot.slane %v241_v3, %v2060_v2  ;;  %3100 = vst [vmem:[#allocation3_spill] sm:$0xff] %v2083_v23  ;;  %s2010_s6 = smov 16  }
  0x12   : > { %v252_v12 = vsub.f32 1.0, %v240_v8  ;;  %v2069_v16 = vrot.slane %v239_v4, %v2060_v2  ;;  %v2073_v18 = vrot.slane %v242_v5, %v2060_v2  ;;  %v2077_v20 = vrot.slane %v240_v8, %v2060_v2 }
  0x13   : > { %v274_v13 = vrot.slane %v253_v6, %v2060_v2  ;;  %v266_v15 = vrot.slane %v251_v7, %v2060_v2  ;;  %v278_v17 = vrot.slane %v254_v11, %v2060_v2  ;;  %v2092_v27 = vmul.f32 %v1929_v10, %v2065_v14 }
  0x14   : > { %v270_v19 = vrot.slane %v252_v12, %v2060_v2  ;;  %v2097_v29 = vmul.f32 %v1929_v10, %v2069_v16  ;;  %v2106_v34 = vmul.f32 %v1929_v10, %v2073_v18  ;;  %v2109_v35 = vmul.f32 %v1929_v10, %v2077_v20 }
  0x15   : > { %v2079_v21 = vmul.f32 %v274_v13, %v241_v3  ;;  %v2081_v22 = vmul.f32 %v266_v15, %v239_v4  ;;  %v2085_v24 = vmul.f32 %v278_v17, %v242_v5  ;;  %3103 = vst [vmem:[#allocation6_spill] sm:$0xff] %v2092_v27  ;;  %vm608_vm2 = vcmp.lt.s32.totalorder %v2197_v44, 111  ;;  %v2246_v15 = vld [vmem:[%s3075_s1 + $0x18] sm:$0xff]  ;;  %v2251_v17 = vld [vmem:[%s3075_s1 + $0x8] sm:$0xff] }
  0x16   : > { %v2087_v25 = vmul.f32 %v270_v19, %v240_v8  ;;  %3104 = vst [vmem:[#allocation7_spill] sm:$0xff] %v2097_v29  ;;  %3105 = vst [vmem:[#allocation8_spill] sm:$0xff] %v2106_v34  ;;  %v2216_v52 = vrot.slane %v248_v45, %v2203_v46  ;;  %v2219_v53 = vrot.slane %v250_v47, %v2203_v46  ;;  %v578_v19 = vsub.s32 7, %v2050_v1 }
  0x17   : > { %3101 = vst [vmem:[#allocation4_spill] sm:$0xff] %v2085_v24  ;;  %v301_v26 = vadd.f32 %v2065_v14, %v2079_v21  ;;  %v299_v28 = vadd.f32 %v2069_v16, %v2081_v22  ;;  %v302_v30 = vadd.f32 %v2073_v18, %v2085_v24  ;;  %3106 = vst [vmem:[#allocation9_spill] sm:$0xff] %v2109_v35  ;;  %vm571_vm4 = vcmp.lt.s32.totalorder %v2197_v44, 112 }
  0x18   : > { %3102 = vst [vmem:[#allocation5_spill] sm:$0xff] %v2087_v25  ;;  %v300_v31 = vadd.f32 %v2077_v20, %v2087_v25  ;;  %3107 = vst [vmem:[#allocation10_spill] sm:$0xff] %v2216_v52  ;;  %v2222_v54 = vrot.slane %v247_v48, %v2203_v46  ;;  %v2225_v55 = vrot.slane %v249_v49, %v2203_v46  ;;  %vm534_vm5 = vcmp.lt.s32.totalorder %v2197_v44, 113 }
  0x19   : > { %v305_v32 = vmul.f32 %v2083_v23, %v301_v26  ;;  %v303_v33 = vmul.f32 %v2083_v23, %v299_v28  ;;  %v306_v36 = vmul.f32 %v2083_v23, %v302_v30  ;;  %3108 = vst [vmem:[#allocation11_spill] sm:$0xff] %v2219_v53  ;;  %v541_v26 = vsub.s32 6, %v2050_v1  ;;  %v2258_v28 = vld [vmem:[%s3075_s1 + $0x10] sm:$0xff]  ;;  %v2264_v30 = vld [vmem:[%s3075_s1] sm:$0xff] }
  0x1a   : > { %v304_v37 = vmul.f32 %v2083_v23, %v300_v31  ;;  %3109 = vst [vmem:[#allocation12_spill] sm:$0xff] %v2222_v54  ;;  %3110 = vst [vmem:[#allocation13_spill] sm:$0xff] %v2225_v55  ;;  %v2281_v47 = vrot.slane %v2264_v30, %v578_v19  ;;  %v2286_v49 = vrot.slane %v2246_v15, %v578_v19  ;;  %vm497_vm6 = vcmp.lt.s32.totalorder %v2197_v44, 127 }
  0x1b   : > { %v2114_v38 = vadd.f32 %v2092_v27, %v305_v32  ;;  %v2117_v39 = vadd.f32 %v2097_v29, %v303_v33  ;;  %v2124_v40 = vadd.f32 %v2106_v34, %v306_v36  ;;  %v2268_v31 = vrot.slane %v2246_v15, %v541_v26 }
  0x1c   : > { %v2127_v41 = vadd.f32 %v2109_v35, %v304_v37  ;;  %v2271_v32 = vrot.slane %v2251_v17, %v541_v26  ;;  %vm399_vm7 = vcmp.lt.s32.totalorder %v2197_v44, 15  ;;  %vm436_vm8 = vcmp.lt.s32.totalorder %v2197_v44, 1 }
  0x1d   : > { %604 = vrot.lane.b32.xlu1 %v2114_v38, %s2002_s24  ;;  %600 = vrot.lane.b32.xlu0 %v2117_v39, %s2002_s24  ;;  %vm325_vm9 = vcmp.lt.s32.totalorder %v2197_v44, 17  ;;  %vm362_vm10 = vcmp.lt.s32.totalorder %v2197_v44, 16  ;;  %v1946_v44 = vld [vmem:[%s3076_s2 + $0xc] sm:$0xf] }
  0x21   : > { %606 = vrot.lane.b32.xlu1 %v2124_v40, %s2002_s24  ;;  %602 = vrot.lane.b32.xlu0 %v2127_v41, %s2002_s24 }
  0x25   : > { %528 = vrot.lane.b32.xlu1 %v2127_v41, %s2003_s25  ;;  %526 = vrot.lane.b32.xlu0 %v2117_v39, %s2003_s25 }
  0x29   : > { %532 = vrot.lane.b32.xlu1 %v2124_v40, %s2003_s25  ;;  %530 = vrot.lane.b32.xlu0 %v2114_v38, %s2003_s25 }
  0x2d   : > { %565 = vrot.lane.b32.xlu1 %v2127_v41, %s2004_s26  ;;  %563 = vrot.lane.b32.xlu0 %v2117_v39, %s2004_s26 }
  0x31   : > { %569 = vrot.lane.b32.xlu1 %v2124_v40, %s2004_s26  ;;  %567 = vrot.lane.b32.xlu0 %v2114_v38, %s2004_s26 }
  0x35   : > { %491 = vrot.lane.b32.xlu1 %v2127_v41, %s2005_s27  ;;  %489 = vrot.lane.b32.xlu0 %v2117_v39, %s2005_s27 }
  0x39   : > { %495 = vrot.lane.b32.xlu1 %v2124_v40, %s2005_s27  ;;  %493 = vrot.lane.b32.xlu0 %v2114_v38, %s2005_s27 }
  0x3d   : > { %393 = vrot.lane.b32.xlu1 %v2127_v41, %s2006_s28  ;;  %391 = vrot.lane.b32.xlu0 %v2117_v39, %s2006_s28 }
  0x41   : > { %397 = vrot.lane.b32.xlu1 %v2124_v40, %s2006_s28  ;;  %395 = vrot.lane.b32.xlu0 %v2114_v38, %s2006_s28 }
  0x45   : > { %430 = vrot.lane.b32.xlu1 %v2127_v41, %s2007_s29  ;;  %428 = vrot.lane.b32.xlu0 %v2117_v39, %s2007_s29 }
  0x49   : > { %434 = vrot.lane.b32.xlu1 %v2124_v40, %s2007_s29  ;;  %432 = vrot.lane.b32.xlu0 %v2114_v38, %s2007_s29 }
  0x4d   : > { %317 = vrot.lane.b32.xlu1 %v2127_v41, %s2008_s30  ;;  %315 = vrot.lane.b32.xlu0 %v2117_v39, %s2008_s30 }
  0x51   : > { %321 = vrot.lane.b32.xlu1 %v2124_v40, %s2008_s30  ;;  %319 = vrot.lane.b32.xlu0 %v2114_v38, %s2008_s30 }
  0x55   : > { %356 = vrot.lane.b32.xlu1 %v2127_v41, %s2010_s6  ;;  %354 = vrot.lane.b32.xlu0 %v2117_v39, %s2010_s6 }
  0x59   : > { %360 = vrot.lane.b32.xlu1 %v2124_v40, %s2010_s6  ;;  %358 = vrot.lane.b32.xlu0 %v2114_v38, %s2010_s6 }
  0x5d   : > { %697 = vperm.xlu0 %1975, %v638_v43   ;;  %v2276_v43 = vrot.slane %v2258_v28, %v541_v26 }
  0x8f   : > { %v605_v50 = vpop.permute.xlu1 %604  ;;  %v601_v51 = vpop.permute.xlu0 %600 }
  0x93   : > { %v607_v56 = vpop.permute.xlu1 %606  ;;  %v603_v57 = vpop.permute.xlu0 %602 }
  0x94   : > { %v609_v58 = vsel %vm608_vm2, %v605_v50, %v607_v56  ;;  %v611_v59 = vsel %vm608_vm2, %v601_v51, %v603_v57  ;;  %v610_v60 = vsel %vm608_vm2, %v603_v57, %v605_v50  ;;  %v612_v61 = vsel %vm608_vm2, %v607_v56, %v601_v51 }
  0x95   : > { %v630_v62 = vmul.f32 %v2216_v52, %v610_v60  ;;  %v632_v63 = vmul.f32 %v2219_v53, %v612_v61  ;;  %v629_v0 = vmul.f32 %v2222_v54, %v611_v59  ;;  %v631_v3 = vmul.f32 %v2225_v55, %v609_v58 }
  0x96   : > { %v2289_v50 = vrot.slane %v2251_v17, %v578_v19  ;;  %v2292_v51 = vrot.slane %v2258_v28, %v578_v19  ;;  %v2295_v56 = vrot.slane %v2264_v30, %v541_v26  ;;  %v504_v58 = vsub.s32 5, %v2050_v1 }
  0x97   : > { %v529_v4 = vpop.permute.xlu1 %528  ;;  %v527_v5 = vpop.permute.xlu0 %526  ;;  %v692_v6 = vpack.c.bf16 %v630_v62, %v630_v62  ;;  %v694_v7 = vpack.c.bf16 %v632_v63, %v632_v63  ;;  %v691_v8 = vpack.c.bf16 %v629_v0, %v629_v0  ;;  %v693_v9 = vpack.c.bf16 %v631_v3, %v631_v3 }
  0x98   : > { %3111 = vst [vmem:[#allocation14_spill] sm:$0xff] %v2295_v56  ;;  %v467_v59 = vsub.s32 4, %v2050_v1  ;;  %v537_v60 = vsel %vm534_vm5, %v527_v5, %v529_v4 }
  0x99   : > { %1930 = vmatprep.subr.msk.bf16.mxu0 %vm704_vm3, %v692_v6  ;;  %1932 = vmatprep.subr.msk.bf16.mxu1 %vm704_vm3, %v694_v7  ;;  %v706_v10 = vsel %vm704_vm3, %v691_v8, 0  ;;  %v712_v11 = vsel %vm704_vm3, %v693_v9, 0 }
  0x9a   : > { %724 = vmatpush1.bf16.msra.mxu0 %v706_v10  ;;  %765 = vmatpush1.bf16.msra.mxu1 %v712_v11  ;;  %v555_v11 = vmul.f32 %v2295_v56, %v537_v60  ;;  %v2325_v19 = vrot.slane %v2264_v30, %v467_v59 }
  0x9b   : > { %v533_v12 = vpop.permute.xlu1 %532  ;;  %v531_v13 = vpop.permute.xlu0 %530 }
  0x9c   : > { %v538_v37 = vsel %vm534_vm5, %v533_v12, %v527_v5  ;;  %v536_v45 = vsel %vm534_vm5, %v529_v4, %v531_v13  ;;  %v535_v57 = vsel %vm534_vm5, %v531_v13, %v533_v12  ;;  %v2319_v12 = vrot.slane %v2251_v17, %v467_v59 }
  0x9d   : > { %v558_v61 = vmul.f32 %v2268_v31, %v538_v37  ;;  %v556_v62 = vmul.f32 %v2271_v32, %v536_v45  ;;  %v557_v4 = vmul.f32 %v2276_v43, %v535_v57  ;;  %v2322_v13 = vrot.slane %v2246_v15, %v467_v59 }
  0x9e   : > { %v2331_v57 = vrot.slane %v2264_v30, %v504_v58 }
  0x9f   : > { %v566_v33 = vpop.permute.xlu1 %565  ;;  %v564_v36 = vpop.permute.xlu0 %563 }
  0xa0   : > { %v574_v48 = vsel %vm571_vm4, %v564_v36, %v566_v33 }
  0xa1   : > { %v592_v3 = vmul.f32 %v2281_v47, %v574_v48  ;;  %v2328_v48 = vrot.slane %v2258_v28, %v467_v59 }
  0xa3   : > { %v570_v63 = vpop.permute.xlu1 %569  ;;  %v568_v0 = vpop.permute.xlu0 %567  ;;  %v687_v60 = vpack.c.bf16 %v592_v3, %v555_v11  ;;  %v482_v3 = vmul.f32 %v2319_v12, %v2127_v41 }
  0xa4   : > { %v575_v6 = vsel %vm571_vm4, %v570_v63, %v564_v36  ;;  %v572_v7 = vsel %vm571_vm4, %v568_v0, %v570_v63  ;;  %v573_v8 = vsel %vm571_vm4, %v566_v33, %v568_v0  ;;  %v2334_v63 = vrot.slane %v2246_v15, %v504_v58 }
  0xa5   : > { %v595_v5 = vmul.f32 %v2286_v49, %v575_v6  ;;  %v593_v9 = vmul.f32 %v2289_v50, %v573_v8  ;;  %v594_v10 = vmul.f32 %v2292_v51, %v572_v7  ;;  %v2339_v6 = vrot.slane %v2251_v17, %v504_v58 }
  0xa6   : > { %v484_v7 = vmul.f32 %v2322_v13, %v2124_v40  ;;  %v481_v8 = vmul.f32 %v2325_v19, %v2117_v39 }
  0xa7   : > { %v492_v26 = vpop.permute.xlu1 %491  ;;  %v490_v33 = vpop.permute.xlu0 %489  ;;  %v688_v36 = vpack.c.bf16 %v593_v9, %v556_v62  ;;  %v690_v37 = vpack.c.bf16 %v595_v5, %v558_v61  ;;  %v689_v45 = vpack.c.bf16 %v594_v10, %v557_v4  ;;  %v2342_v61 = vrot.slane %v2258_v28, %v504_v58 }
  0xa8   : > { %v500_v0 = vsel %vm497_vm6, %v490_v33, %v492_v26  ;;  %v483_v4 = vmul.f32 %v2328_v48, %v2114_v38 }
  0xa9   : > { %725 = vmatprep.subr.bf16.mxu0 %v688_v36  ;;  %766 = vmatprep.subr.bf16.mxu1 %v690_v37  ;;  %v518_v5 = vmul.f32 %v2331_v57, %v500_v0 }
  0xaa   : > { %726 = vmatpush1.bf16.msra.mxu0 %v687_v60  ;;  %767 = vmatpush1.bf16.msra.mxu1 %v689_v45 }
  0xab   : > { %v496_v59 = vpop.permute.xlu1 %495  ;;  %v494_v62 = vpop.permute.xlu0 %493  ;;  %v683_v60 = vpack.c.bf16 %v518_v5, %v481_v8 }
  0xac   : > { %v501_v58 = vsel %vm497_vm6, %v496_v59, %v490_v33  ;;  %v498_v9 = vsel %vm497_vm6, %v494_v62, %v496_v59  ;;  %v499_v41 = vsel %vm497_vm6, %v492_v26, %v494_v62  ;;  %v406_v33 = vsub.s32 2, %v2050_v1 }
  0xad   : > { %v521_v10 = vmul.f32 %v2334_v63, %v501_v58  ;;  %v519_v40 = vmul.f32 %v2339_v6, %v499_v41  ;;  %v520_v39 = vmul.f32 %v2342_v61, %v498_v9  ;;  %v2370_v62 = vrot.slane %v2251_v17, %v2060_v2 }
  0xae   : > { %v2365_v59 = vrot.slane %v2251_v17, %v406_v33  ;;  %v2378_v8 = vrot.slane %v2258_v28, %v406_v33 }
  0xaf   : > { %v394_v11 = vpop.permute.xlu1 %393  ;;  %v392_v36 = vpop.permute.xlu0 %391  ;;  %v684_v38 = vpack.c.bf16 %v519_v40, %v482_v3  ;;  %v686_v37 = vpack.c.bf16 %v521_v10, %v484_v7  ;;  %v685_v45 = vpack.c.bf16 %v520_v39, %v483_v4  ;;  %v2375_v7 = vrot.slane %v2264_v30, %v406_v33 }
  0xb0   : > { %v402_v3 = vsel %vm399_vm7, %v392_v36, %v394_v11  ;;  %v2381_v4 = vrot.slane %v2246_v15, %v406_v33  ;;  %v2389_v10 = vrot.slane %v2264_v30, %v2060_v2  ;;  %v2393_v40 = vrot.slane %v2258_v28, %v2060_v2 }
  0xb1   : > { %727 = vmatprep.subr.bf16.mxu0 %v684_v38  ;;  %768 = vmatprep.subr.bf16.mxu1 %v686_v37  ;;  %v421_v39 = vmul.f32 %v2365_v59, %v402_v3 }
  0xb2   : > { %728 = vmatpush1.bf16.msra.mxu0 %v683_v60  ;;  %769 = vmatpush1.bf16.msra.mxu1 %v685_v45 }
  0xb3   : > { %v398_v26 = vpop.permute.xlu1 %397  ;;  %v396_v0 = vpop.permute.xlu0 %395 }
  0xb4   : > { %v403_v9 = vsel %vm399_vm7, %v398_v26, %v392_v36  ;;  %v401_v38 = vsel %vm399_vm7, %v394_v11, %v396_v0  ;;  %v2401_v36 = vrot.slane %v2246_v15, %v2060_v2  ;;  %v400_v45 = vsel %vm399_vm7, %v396_v0, %v398_v26 }
  0xb5   : > { %v420_v60 = vmul.f32 %v2375_v7, %v403_v9  ;;  %v422_v27 = vmul.f32 %v2378_v8, %v401_v38 }
  0xb7   : > { %v431_v5 = vpop.permute.xlu1 %430  ;;  %v429_v58 = vpop.permute.xlu0 %428 }
  0xb8   : > { %v439_v41 = vsel %vm436_vm8, %v429_v58, %v431_v5 }
  0xb9   : > { %v458_v37 = vmul.f32 %v2370_v62, %v439_v41  ;;  %v423_v41 = vmul.f32 %v2381_v4, %v400_v45  ;;  %v2421_v45 = vrot.slane %v2251_v17, %v2203_v46 }
  0xbb   : > { %v435_v33 = vpop.permute.xlu1 %434  ;;  %v433_v42 = vpop.permute.xlu0 %432  ;;  %v680_v34 = vpack.c.bf16 %v458_v37, %v421_v39 }
  0xbc   : > { %v440_v3 = vsel %vm436_vm8, %v435_v33, %v429_v58  ;;  %v437_v11 = vsel %vm436_vm8, %v433_v42, %v435_v33  ;;  %v438_v2 = vsel %vm436_vm8, %v431_v5, %v433_v42  ;;  %v369_v33 = vsub.s32 1, %v2050_v1 }
  0xbd   : > { %v457_v26 = vmul.f32 %v2389_v10, %v440_v3  ;;  %v459_v0 = vmul.f32 %v2393_v40, %v438_v2  ;;  %v460_v9 = vmul.f32 %v2401_v36, %v437_v11  ;;  %729 = vmatprep.subr.bf16.mxu0 %v680_v34  ;;  %v2431_v1 = vrot.slane %v2264_v30, %v2203_v46 }
  0xbe   : > { %v2425_v34 = vrot.slane %v2251_v17, %v369_v33 }
  0xbf   : > { %v318_v39 = vpop.permute.xlu1 %317  ;;  %v316_v38 = vpop.permute.xlu0 %315  ;;  %v679_v37 = vpack.c.bf16 %v457_v26, %v420_v60  ;;  %v682_v35 = vpack.c.bf16 %v460_v9, %v423_v41  ;;  %v681_v58 = vpack.c.bf16 %v459_v0, %v422_v27  ;;  %v2439_v60 = vrot.slane %v2246_v15, %v2203_v46 }
  0xc0   : > { %v328_v27 = vsel %vm325_vm9, %v316_v38, %v318_v39  ;;  %v2446_v41 = vrot.slane %v2264_v30, %v369_v33  ;;  %v2449_v26 = vrot.slane %v2258_v28, %v369_v33 }
  0xc1   : > { %730 = vmatpush1.bf16.msra.mxu0 %v679_v37  ;;  %770 = vmatprep.subr.bf16.mxu1 %v682_v35  ;;  %v2435_v35 = vrot.slane %v2258_v28, %v2203_v46  ;;  %v347_v0 = vmul.f32 %v2421_v45, %v328_v27  ;;  %v2456_v37 = vrot.slane %v2246_v15, %v369_v33 }
  0xc2   : > { %771 = vmatpush1.bf16.msra.mxu1 %v681_v58 }
  0xc3   : > { %v322_v42 = vpop.permute.xlu1 %321  ;;  %v320_v5 = vpop.permute.xlu0 %319 }
  0xc4   : > { %v329_v17 = vsel %vm325_vm9, %v322_v42, %v316_v38  ;;  %v327_v46 = vsel %vm325_vm9, %v318_v39, %v320_v5  ;;  %v326_v38 = vsel %vm325_vm9, %v320_v5, %v322_v42 }
  0xc5   : > { %v346_v58 = vmul.f32 %v2431_v1, %v329_v17  ;;  %v348_v28 = vmul.f32 %v2435_v35, %v327_v46  ;;  %v349_v33 = vmul.f32 %v2439_v60, %v326_v38 }
  0xc7   : > { %v357_v3 = vpop.permute.xlu1 %356  ;;  %v355_v11 = vpop.permute.xlu0 %354 }
  0xc8   : > { %v365_v2 = vsel %vm362_vm10, %v355_v11, %v357_v3 }
  0xc9   : > { %v384_v9 = vmul.f32 %v2425_v34, %v365_v2 }
  0xcb   : > { %v361_v30 = vpop.permute.xlu1 %360  ;;  %v359_v29 = vpop.permute.xlu0 %358  ;;  %v676_v24 = vpack.c.bf16 %v384_v9, %v347_v0 }
  0xcc   : > { %v366_v27 = vsel %vm362_vm10, %v361_v30, %v355_v11  ;;  %v363_v39 = vsel %vm362_vm10, %v359_v29, %v361_v30  ;;  %v364_v15 = vsel %vm362_vm10, %v357_v3, %v359_v29  ;;  %v637_v11 = vld [vmem:[%s3076_s2] sm:$0xf]  ;;  %v3112_v29 = vmov 0  }
  0xcd   : > { %v383_v42 = vmul.f32 %v2446_v41, %v366_v27  ;;  %v385_v5 = vmul.f32 %v2449_v26, %v364_v15  ;;  %v386_v17 = vmul.f32 %v2456_v37, %v363_v39  ;;  %731 = vmatprep.subr.bf16.mxu0 %v676_v24 }
  0xcf   : > { %v675_v2 = vpack.c.bf16 %v383_v42, %v346_v58  ;;  %v678_v0 = vpack.c.bf16 %v386_v17, %v349_v33  ;;  %v677_v46 = vpack.c.bf16 %v385_v5, %v348_v28 }
  0xd1   : > { %732 = vmatpush1.bf16.msra.mxu0 %v675_v2  ;;  %772 = vmatprep.subr.bf16.mxu1 %v678_v0 }
  0xd2   : > { %773 = vmatpush1.bf16.msra.mxu1 %v677_v46 }
  0xd4   : > { %1931 = vmatmul.mubr.msk.bf16.vlgmr.msra.gmra.mxu0 %vm700_vm11, %v637_v11 }
  0xd5   : > { %1933 = vmatmul.mubr.msk.bf16.vlgmr.msra.gmra.mxu1 %vm700_vm11, %v637_v11  ;;  %1083 = vmatprep.mubr.bf16.mxu0 %v3112_v29  ;;  %v1935_v11 = vld [vmem:[%s3077_s3 + $0x8] sm:$0xff] }
  0xd6   : > { %1124 = vmatprep.mubr.bf16.mxu1 %v3112_v29 }
  0xd8   : > { %v698_v24 = vpop.permute.xlu0 %697 }
 0x194   : > { %v751_v3 = vpop.f32.mrf.mxu0 }
 0x195   : > { %v752_v9 = vadd.f32 %v751_v3, %v698_v24  ;;  %v792_v38 = vpop.f32.mrf.mxu1 }
 0x196   : > { %v793_v58 = vadd.f32 %v792_v38, %v698_v24  ;;  %v753_v30 = vpop.f32.mrf.mxu0 }
 0x197   : > { %v2479_v28 = vmax.f32 %v752_v9, 0.0  ;;  %v754_v27 = vadd.f32 %v753_v30, %v698_v24  ;;  %v794_v39 = vpop.f32.mrf.mxu1 }
 0x198   : > { %v2481_v15 = vmax.f32 %v793_v58, 0.0  ;;  %v755_v33 = vpop.f32.mrf.mxu0  ;;  %v795_v2 = vadd.f32 %v794_v39, %v698_v24 }
 0x199   : > { %v796_v42 = vpop.f32.mrf.mxu1  ;;  %951 = vrot.lane.b32.xlu1 %v2479_v28, %s2002_s24  ;;  %v2487_v17 = vmax.f32 %v754_v27, 0.0 }
 0x19a   : > { %955 = vrot.lane.b32.xlu0 %v2481_v15, %s2002_s24  ;;  %v756_v5 = vpop.f32.mrf.mxu0  ;;  %v2493_v46 = vmax.f32 %v795_v2, 0.0 }
 0x19b   : > { %v797_v0 = vpop.f32.mrf.mxu1 }
 0x19d   : > { %953 = vrot.lane.b32.xlu1 %v2487_v17, %s2002_s24 }
 0x19e   : > { %911 = vrot.lane.b32.xlu0 %v2479_v28, %s2003_s25 }
 0x1a1   : > { %957 = vrot.lane.b32.xlu1 %v2493_v46, %s2002_s24 }
 0x1a2   : > { %915 = vrot.lane.b32.xlu0 %v2481_v15, %s2003_s25 }
 0x1a5   : > { %913 = vrot.lane.b32.xlu1 %v2487_v17, %s2003_s25 }
 0x1a6   : > { %931 = vrot.lane.b32.xlu0 %v2479_v28, %s2004_s26 }
 0x1a9   : > { %917 = vrot.lane.b32.xlu1 %v2493_v46, %s2003_s25 }
 0x1aa   : > { %935 = vrot.lane.b32.xlu0 %v2481_v15, %s2004_s26 }
 0x1ad   : > { %933 = vrot.lane.b32.xlu1 %v2487_v17, %s2004_s26 }
 0x1ae   : > { %891 = vrot.lane.b32.xlu0 %v2479_v28, %s2005_s27 }
 0x1b1   : > { %937 = vrot.lane.b32.xlu1 %v2493_v46, %s2004_s26 }
 0x1b2   : > { %895 = vrot.lane.b32.xlu0 %v2481_v15, %s2005_s27 }
 0x1b5   : > { %893 = vrot.lane.b32.xlu1 %v2487_v17, %s2005_s27 }
 0x1b6   : > { %843 = vrot.lane.b32.xlu0 %v2479_v28, %s2006_s28 }
 0x1b9   : > { %897 = vrot.lane.b32.xlu1 %v2493_v46, %s2005_s27 }
 0x1ba   : > { %847 = vrot.lane.b32.xlu0 %v2481_v15, %s2006_s28 }
 0x1bd   : > { %845 = vrot.lane.b32.xlu1 %v2487_v17, %s2006_s28 }
 0x1be   : > { %863 = vrot.lane.b32.xlu0 %v2479_v28, %s2007_s29 }
 0x1c1   : > { %849 = vrot.lane.b32.xlu1 %v2493_v46, %s2006_s28 }
 0x1c2   : > { %867 = vrot.lane.b32.xlu0 %v2481_v15, %s2007_s29 }
 0x1c5   : > { %865 = vrot.lane.b32.xlu1 %v2487_v17, %s2007_s29 }
 0x1c6   : > { %803 = vrot.lane.b32.xlu0 %v2479_v28, %s2008_s30 }
 0x1c9   : > { %869 = vrot.lane.b32.xlu1 %v2493_v46, %s2007_s29 }
 0x1ca   : > { %807 = vrot.lane.b32.xlu0 %v2481_v15, %s2008_s30 }
 0x1cd   : > { %805 = vrot.lane.b32.xlu1 %v2487_v17, %s2008_s30 }
 0x1ce   : > { %823 = vrot.lane.b32.xlu0 %v2479_v28, %s2010_s6 }
 0x1d1   : > { %809 = vrot.lane.b32.xlu1 %v2493_v46, %s2008_s30 }
 0x1d2   : > { %827 = vrot.lane.b32.xlu0 %v2481_v15, %s2010_s6 }
 0x1d5   : > { %825 = vrot.lane.b32.xlu1 %v2487_v17, %s2010_s6 }
 0x1d6   : > { %1033 = vperm.xlu0 %1975, %v1935_v11  }
 0x1d9   : > { %829 = vrot.lane.b32.xlu1 %v2493_v46, %s2010_s6 }
 0x20b   : > { %v952_v24 = vpop.permute.xlu1 %951 }
 0x20c   : > { %v956_v3 = vpop.permute.xlu0 %955 }
 0x20f   : > { %v954_v9 = vpop.permute.xlu1 %953 }
 0x210   : > { %v960_v38 = vsel %vm608_vm2, %v954_v9, %v956_v3  ;;  %v961_v58 = vsel %vm608_vm2, %v952_v24, %v954_v9  ;;  %v912_v30 = vpop.permute.xlu0 %911 }
 0x211   : > { %v963_v27 = vmul.f32 %v961_v58, %v2222_v54  ;;  %v964_v39 = vmul.f32 %v960_v38, %v2216_v52 }
 0x213   : > { %v1027_v33 = vpack.c.bf16 %v963_v27, %v963_v27  ;;  %v1028_v42 = vpack.c.bf16 %v964_v39, %v964_v39  ;;  %v958_v5 = vpop.permute.xlu1 %957 }
 0x214   : > { %v959_v2 = vsel %vm608_vm2, %v956_v3, %v958_v5  ;;  %v962_v0 = vsel %vm608_vm2, %v958_v5, %v952_v24  ;;  %v916_v11 = vpop.permute.xlu0 %915 }
 0x215   : > { %v965_v25 = vmul.f32 %v959_v2, %v2225_v55  ;;  %v966_v23 = vmul.f32 %v962_v0, %v2219_v53  ;;  %1936 = vmatprep.subr.msk.bf16.mxu0 %vm704_vm3, %v1028_v42  ;;  %v1040_v9 = vsel %vm704_vm3, %v1027_v33, 0 }
 0x216   : > { %1058 = vmatpush1.bf16.msra.mxu0 %v1040_v9 }
 0x217   : > { %v1029_v38 = vpack.c.bf16 %v965_v25, %v965_v25  ;;  %v1030_v58 = vpack.c.bf16 %v966_v23, %v966_v23  ;;  %v914_v27 = vpop.permute.xlu1 %913 }
 0x218   : > { %v932_v39 = vpop.permute.xlu0 %931  ;;  %v920_v2 = vsel %vm534_vm5, %v914_v27, %v916_v11  ;;  %v921_v42 = vsel %vm534_vm5, %v912_v30, %v914_v27 }
 0x219   : > { %1938 = vmatprep.subr.msk.bf16.mxu1 %vm704_vm3, %v1030_v58  ;;  %v1046_v3 = vsel %vm704_vm3, %v1029_v38, 0  ;;  %v923_v9 = vmul.f32 %v921_v42, %v2295_v56  ;;  %v924_v38 = vmul.f32 %v920_v2, %v2271_v32 }
 0x21a   : > { %1099 = vmatpush1.bf16.msra.mxu1 %v1046_v3 }
 0x21b   : > { %v918_v24 = vpop.permute.xlu1 %917 }
 0x21c   : > { %v936_v5 = vpop.permute.xlu0 %935  ;;  %v919_v53 = vsel %vm534_vm5, %v916_v11, %v918_v24  ;;  %v922_v27 = vsel %vm534_vm5, %v918_v24, %v912_v30 }
 0x21f   : > { %v934_v0 = vpop.permute.xlu1 %933 }
 0x220   : > { %v940_v25 = vsel %vm571_vm4, %v934_v0, %v936_v5  ;;  %v941_v23 = vsel %vm571_vm4, %v932_v39, %v934_v0  ;;  %v892_v33 = vpop.permute.xlu0 %891 }
 0x221   : > { %v943_v58 = vmul.f32 %v941_v23, %v2281_v47  ;;  %v944_v3 = vmul.f32 %v940_v25, %v2289_v50  ;;  %v925_v23 = vmul.f32 %v919_v53, %v2276_v43  ;;  %v926_v25 = vmul.f32 %v922_v27, %v2268_v31 }
 0x222   : > { %v883_v53 = vmul.f32 %v2479_v28, %v2325_v19  ;;  %v885_v28 = vmul.f32 %v2481_v15, %v2328_v48 }
 0x223   : > { %v1023_v55 = vpack.c.bf16 %v943_v58, %v923_v9  ;;  %v938_v52 = vpop.permute.xlu1 %937  ;;  %v1024_v54 = vpack.c.bf16 %v944_v3, %v924_v38 }
 0x224   : > { %v939_v0 = vsel %vm571_vm4, %v936_v5, %v938_v52  ;;  %v942_v42 = vsel %vm571_vm4, %v938_v52, %v932_v39  ;;  %v896_v2 = vpop.permute.xlu0 %895 }
 0x225   : > { %v945_v56 = vmul.f32 %v939_v0, %v2292_v51  ;;  %v946_v11 = vmul.f32 %v942_v42, %v2286_v49  ;;  %1059 = vmatprep.subr.bf16.mxu0 %v1024_v54  ;;  %v884_v54 = vmul.f32 %v2487_v17, %v2319_v12  ;;  %v886_v17 = vmul.f32 %v2493_v46, %v2322_v13 }
 0x226   : > { %1060 = vmatpush1.bf16.msra.mxu0 %v1023_v55 }
 0x227   : > { %v1025_v30 = vpack.c.bf16 %v945_v56, %v925_v23  ;;  %v894_v24 = vpop.permute.xlu1 %893  ;;  %v1026_v9 = vpack.c.bf16 %v946_v11, %v926_v25 }
 0x228   : > { %v900_v5 = vsel %vm497_vm6, %v894_v24, %v896_v2  ;;  %v901_v52 = vsel %vm497_vm6, %v892_v33, %v894_v24  ;;  %v844_v39 = vpop.permute.xlu0 %843 }
 0x229   : > { %v903_v38 = vmul.f32 %v901_v52, %v2331_v57  ;;  %v904_v58 = vmul.f32 %v900_v5, %v2339_v6  ;;  %1100 = vmatprep.subr.bf16.mxu1 %v1026_v9 }
 0x22a   : > { %1101 = vmatpush1.bf16.msra.mxu1 %v1025_v30 }
 0x22b   : > { %v1019_v55 = vpack.c.bf16 %v903_v38, %v883_v53  ;;  %v898_v56 = vpop.permute.xlu1 %897  ;;  %v1020_v3 = vpack.c.bf16 %v904_v58, %v884_v54 }
 0x22c   : > { %v899_v27 = vsel %vm497_vm6, %v896_v2, %v898_v56  ;;  %v902_v0 = vsel %vm497_vm6, %v898_v56, %v892_v33  ;;  %v848_v42 = vpop.permute.xlu0 %847 }
 0x22d   : > { %v905_v23 = vmul.f32 %v899_v27, %v2342_v61  ;;  %v906_v25 = vmul.f32 %v902_v0, %v2334_v63  ;;  %1061 = vmatprep.subr.bf16.mxu0 %v1020_v3 }
 0x22e   : > { %1062 = vmatpush1.bf16.msra.mxu0 %v1019_v55 }
 0x22f   : > { %v1021_v11 = vpack.c.bf16 %v905_v23, %v885_v28  ;;  %v846_v30 = vpop.permute.xlu1 %845  ;;  %v1022_v24 = vpack.c.bf16 %v906_v25, %v886_v17 }
 0x230   : > { %v864_v2 = vpop.permute.xlu0 %863  ;;  %v853_v15 = vsel %vm399_vm7, %v844_v39, %v846_v30  ;;  %v852_v56 = vsel %vm399_vm7, %v846_v30, %v848_v42 }
 0x231   : > { %1102 = vmatprep.subr.bf16.mxu1 %v1022_v24  ;;  %v856_v38 = vmul.f32 %v853_v15, %v2365_v59 }
 0x232   : > { %1103 = vmatpush1.bf16.msra.mxu1 %v1021_v11 }
 0x233   : > { %v850_v33 = vpop.permute.xlu1 %849 }
 0x234   : > { %v868_v9 = vpop.permute.xlu0 %867  ;;  %v851_v54 = vsel %vm399_vm7, %v848_v42, %v850_v33  ;;  %v854_v55 = vsel %vm399_vm7, %v850_v33, %v844_v39  ;;  %v857_v42 = vmul.f32 %v852_v56, %v2378_v8 }
 0x235   : > { %v855_v17 = vmul.f32 %v854_v55, %v2375_v7  ;;  %v858_v11 = vmul.f32 %v851_v54, %v2381_v4 }
 0x237   : > { %v866_v5 = vpop.permute.xlu1 %865 }
 0x238   : > { %v873_v52 = vsel %vm436_vm8, %v864_v2, %v866_v5  ;;  %v804_v53 = vpop.permute.xlu0 %803  ;;  %v872_v46 = vsel %vm436_vm8, %v866_v5, %v868_v9 }
 0x239   : > { %v876_v58 = vmul.f32 %v873_v52, %v2370_v62  ;;  %v877_v0 = vmul.f32 %v872_v46, %v2393_v40 }
 0x23b   : > { %v870_v3 = vpop.permute.xlu1 %869  ;;  %v1016_v27 = vpack.c.bf16 %v876_v58, %v856_v38  ;;  %v1017_v5 = vpack.c.bf16 %v877_v0, %v857_v42 }
 0x23c   : > { %v871_v28 = vsel %vm436_vm8, %v868_v9, %v870_v3  ;;  %v874_v23 = vsel %vm436_vm8, %v870_v3, %v864_v2  ;;  %v808_v25 = vpop.permute.xlu0 %807 }
 0x23d   : > { %v875_v39 = vmul.f32 %v874_v23, %v2389_v10  ;;  %v878_v24 = vmul.f32 %v871_v28, %v2401_v36  ;;  %1063 = vmatprep.subr.bf16.mxu0 %v1016_v27 }
 0x23f   : > { %v1015_v30 = vpack.c.bf16 %v875_v39, %v855_v17  ;;  %v806_v33 = vpop.permute.xlu1 %805  ;;  %v1018_v15 = vpack.c.bf16 %v878_v24, %v858_v11 }
 0x240   : > { %v824_v9 = vpop.permute.xlu0 %823  ;;  %v813_v52 = vsel %vm325_vm9, %v804_v53, %v806_v33  ;;  %v812_v0 = vsel %vm325_vm9, %v806_v33, %v808_v25 }
 0x241   : > { %1064 = vmatpush1.bf16.msra.mxu0 %v1015_v30  ;;  %1104 = vmatprep.subr.bf16.mxu1 %v1018_v15  ;;  %v816_v54 = vmul.f32 %v813_v52, %v2421_v45 }
 0x242   : > { %1105 = vmatpush1.bf16.msra.mxu1 %v1017_v5 }
 0x243   : > { %v810_v2 = vpop.permute.xlu1 %809 }
 0x244   : > { %v828_v46 = vpop.permute.xlu0 %827  ;;  %v811_v3 = vsel %vm325_vm9, %v808_v25, %v810_v2  ;;  %v814_v27 = vsel %vm325_vm9, %v810_v2, %v804_v53  ;;  %v817_v25 = vmul.f32 %v812_v0, %v2435_v35 }
 0x245   : > { %v815_v24 = vmul.f32 %v814_v27, %v2431_v1  ;;  %v818_v42 = vmul.f32 %v811_v3, %v2439_v60 }
 0x247   : > { %v826_v38 = vpop.permute.xlu1 %825 }
 0x248   : > { %v833_v58 = vsel %vm362_vm10, %v824_v9, %v826_v38  ;;  %v832_v55 = vsel %vm362_vm10, %v826_v38, %v828_v46 }
 0x249   : > { %v836_v56 = vmul.f32 %v833_v58, %v2425_v34  ;;  %v837_v17 = vmul.f32 %v832_v55, %v2449_v26 }
 0x24b   : > { %v830_v28 = vpop.permute.xlu1 %829  ;;  %v1012_v23 = vpack.c.bf16 %v836_v56, %v816_v54  ;;  %v1013_v5 = vpack.c.bf16 %v837_v17, %v817_v25 }
 0x24c   : > { %v831_v11 = vsel %vm362_vm10, %v828_v46, %v830_v28  ;;  %v834_v39 = vsel %vm362_vm10, %v830_v28, %v824_v9  ;;  %v1934_v9 = vld [vmem:[%s3076_s2 + $0x4] sm:$0xf] }
 0x24d   : > { %v835_v30 = vmul.f32 %v834_v39, %v2446_v41  ;;  %v838_v53 = vmul.f32 %v831_v11, %v2456_v37  ;;  %1065 = vmatprep.subr.bf16.mxu0 %v1012_v23 }
 0x24f   : > { %v1011_v33 = vpack.c.bf16 %v835_v30, %v815_v24  ;;  %v1014_v15 = vpack.c.bf16 %v838_v53, %v818_v42 }
 0x251   : > { %1066 = vmatpush1.bf16.msra.mxu0 %v1011_v33  ;;  %1106 = vmatprep.subr.bf16.mxu1 %v1014_v15  ;;  %v1034_v2 = vpop.permute.xlu0 %1033 }
 0x252   : > { %1107 = vmatpush1.bf16.msra.mxu1 %v1013_v5  ;;  %v3113_v5 = vld [vmem:[#allocation3_spill] sm:$0xff] }
 0x254   : > { %1937 = vmatmul.mubr.msk.bf16.vlgmr.msra.gmra.mxu0 %vm700_vm11, %v1934_v9 }
 0x255   : > { %1939 = vmatmul.mubr.msk.bf16.vlgmr.msra.gmra.mxu1 %vm700_vm11, %v1934_v9  ;;  %1433 = vmatprep.mubr.bf16.mxu0 %v3112_v29 }
 0x256   : > { %1474 = vmatprep.mubr.bf16.mxu1 %v3112_v29 }
 0x314   : > { %v1085_v52 = vpop.f32.mrf.mxu0 }
 0x315   : > { %v1086_v38 = vadd.f32 %v1085_v52, %v1034_v2  ;;  %v1126_v46 = vpop.f32.mrf.mxu1  ;;  %v3115_v52 = vld [vmem:[#allocation4_spill] sm:$0xff] }
 0x316   : > { %v1127_v58 = vadd.f32 %v1126_v46, %v1034_v2  ;;  %v1087_v54 = vpop.f32.mrf.mxu0  ;;  %v3116_v46 = vld [vmem:[#allocation7_spill] sm:$0xff] }
 0x317   : > { %1977 = vtanh.f32 %v1086_v38  ;;  %v1088_v55 = vadd.f32 %v1087_v54, %v1034_v2  ;;  %v1128_v56 = vpop.f32.mrf.mxu1 }
 0x318   : > { %1979 = vtanh.f32 %v1127_v58  ;;  %v1129_v3 = vadd.f32 %v1128_v56, %v1034_v2  ;;  %v1089_v27 = vpop.f32.mrf.mxu0  ;;  %v3114_v2 = vld [vmem:[#allocation5_spill] sm:$0xff]  ;;  %v3119_v56 = vld [vmem:[#allocation8_spill] sm:$0xff] }
 0x319   : > { %1981 = vtanh.f32 %v1088_v55  ;;  %v1130_v0 = vpop.f32.mrf.mxu1  ;;  %v1941_v27 = vld [vmem:[%s3077_s3 + $0x10] sm:$0xff] }
 0x31a   : > { %1983 = vtanh.f32 %v1129_v3  ;;  %v1090_v28 = vpop.f32.mrf.mxu0 }
 0x31b   : > { %v1131_v23 = vpop.f32.mrf.mxu1 }
 0x324   : > { %v1978_v17 = vpop.eup %1977 }
 0x325   : > { %v1980_v11 = vpop.eup %1979  ;;  %v1137_v39 = vmul.f32 %v1978_v17, %v2069_v16  ;;  %1821 = vst [vmem:[%s232_s19] sm:$0xff] %v1978_v17  ;;  %v3120_v17 = vld [vmem:[#allocation12_spill] sm:$0xff] }
 0x326   : > { %v1982_v24 = vpop.eup %1981  ;;  %v1139_v42 = vmul.f32 %v1980_v11, %v2065_v14  ;;  %1823 = vst [vmem:[%s232_s19 + $0x10] sm:$0xff] %v1980_v11 }
 0x327   : > { %v1984_v30 = vpop.eup %1983  ;;  %v1141_v53 = vadd.f32 %v1137_v39, %v2081_v22  ;;  %v1138_v25 = vmul.f32 %v1982_v24, %v2077_v20  ;;  %1822 = vst [vmem:[%s232_s19 + $0x8] sm:$0xff] %v1982_v24  ;;  %v3117_v20 = vld [vmem:[#allocation9_spill] sm:$0xff] }
 0x328   : > { %v1143_v33 = vadd.f32 %v1139_v42, %v2079_v21  ;;  %v1140_v15 = vmul.f32 %v1984_v30, %v2073_v18  ;;  %1824 = vst [vmem:[%s232_s19 + $0x18] sm:$0xff] %v1984_v30  ;;  %v3118_v18 = vld [vmem:[#allocation6_spill] sm:$0xff] }
 0x329   : > { %v1145_v9 = vmul.f32 %v3113_v5, %v1141_v53  ;;  %v1142_v16 = vadd.f32 %v1138_v25, %v3114_v2  ;;  %v3121_v30 = vld [vmem:[#allocation10_spill] sm:$0xff] }
 0x32a   : > { %v1144_v38 = vadd.f32 %v1140_v15, %v3115_v52  ;;  %v1147_v58 = vmul.f32 %v3113_v5, %v1143_v33 }
 0x32b   : > { %v2683_v14 = vadd.f32 %v1145_v9, %v3116_v46  ;;  %v1146_v22 = vmul.f32 %v3113_v5, %v1142_v16  ;;  %v3122_v9 = vld [vmem:[#allocation13_spill] sm:$0xff]  ;;  %v3123_v16 = vld [vmem:[#allocation11_spill] sm:$0xff] }
 0x32c   : > { %v1148_v21 = vmul.f32 %v3113_v5, %v1144_v38  ;;  %v2694_v55 = vadd.f32 %v1147_v58, %v3118_v18 }
 0x32d   : > { %v2688_v54 = vadd.f32 %v1146_v22, %v3117_v20  ;;  %1301 = vrot.lane.b32.xlu1 %v2683_v14, %s2002_s24 }
 0x32e   : > { %v2699_v3 = vadd.f32 %v1148_v21, %v3119_v56 }
 0x32f   : > { %1303 = vrot.lane.b32.xlu0 %v2688_v54, %s2002_s24 }
 0x331   : > { %1305 = vrot.lane.b32.xlu1 %v2694_v55, %s2002_s24 }
 0x333   : > { %1307 = vrot.lane.b32.xlu0 %v2699_v3, %s2002_s24 }
 0x335   : > { %1261 = vrot.lane.b32.xlu1 %v2683_v14, %s2003_s25 }
 0x337   : > { %1263 = vrot.lane.b32.xlu0 %v2688_v54, %s2003_s25 }
 0x339   : > { %1265 = vrot.lane.b32.xlu1 %v2694_v55, %s2003_s25 }
 0x33b   : > { %1267 = vrot.lane.b32.xlu0 %v2699_v3, %s2003_s25 }
 0x33d   : > { %1281 = vrot.lane.b32.xlu1 %v2683_v14, %s2004_s26 }
 0x33f   : > { %1283 = vrot.lane.b32.xlu0 %v2688_v54, %s2004_s26 }
 0x341   : > { %1285 = vrot.lane.b32.xlu1 %v2694_v55, %s2004_s26 }
 0x343   : > { %1287 = vrot.lane.b32.xlu0 %v2699_v3, %s2004_s26 }
 0x345   : > { %1241 = vrot.lane.b32.xlu1 %v2683_v14, %s2005_s27 }
 0x347   : > { %1243 = vrot.lane.b32.xlu0 %v2688_v54, %s2005_s27 }
 0x349   : > { %1245 = vrot.lane.b32.xlu1 %v2694_v55, %s2005_s27 }
 0x34b   : > { %1247 = vrot.lane.b32.xlu0 %v2699_v3, %s2005_s27 }
 0x34d   : > { %1193 = vrot.lane.b32.xlu1 %v2683_v14, %s2006_s28 }
 0x34f   : > { %1195 = vrot.lane.b32.xlu0 %v2688_v54, %s2006_s28 }
 0x351   : > { %1197 = vrot.lane.b32.xlu1 %v2694_v55, %s2006_s28 }
 0x353   : > { %1199 = vrot.lane.b32.xlu0 %v2699_v3, %s2006_s28 }
 0x355   : > { %1213 = vrot.lane.b32.xlu1 %v2683_v14, %s2007_s29 }
 0x357   : > { %1215 = vrot.lane.b32.xlu0 %v2688_v54, %s2007_s29 }
 0x359   : > { %1217 = vrot.lane.b32.xlu1 %v2694_v55, %s2007_s29 }
 0x35b   : > { %1219 = vrot.lane.b32.xlu0 %v2699_v3, %s2007_s29 }
 0x35d   : > { %1153 = vrot.lane.b32.xlu1 %v2683_v14, %s2008_s30 }
 0x35f   : > { %1155 = vrot.lane.b32.xlu0 %v2688_v54, %s2008_s30 }
 0x361   : > { %1157 = vrot.lane.b32.xlu1 %v2694_v55, %s2008_s30 }
 0x363   : > { %1159 = vrot.lane.b32.xlu0 %v2699_v3, %s2008_s30 }
 0x365   : > { %1173 = vrot.lane.b32.xlu1 %v2683_v14, %s2010_s6 }
 0x367   : > { %1175 = vrot.lane.b32.xlu0 %v2688_v54, %s2010_s6 }
 0x369   : > { %1177 = vrot.lane.b32.xlu1 %v2694_v55, %s2010_s6 }
 0x36b   : > { %1179 = vrot.lane.b32.xlu0 %v2699_v3, %s2010_s6 }
 0x36d   : > { %1383 = vperm.xlu1 %1976, %v1941_v27  }
 0x39f   : > { %v1302_v0 = vpop.permute.xlu1 %1301 }
 0x3a1   : > { %v1304_v28 = vpop.permute.xlu0 %1303 }
 0x3a2   : > { %v1311_v23 = vsel %vm608_vm2, %v1302_v0, %v1304_v28 }
 0x3a3   : > { %v1313_v11 = vmul.f32 %v1311_v23, %v3120_v17  ;;  %v1306_v39 = vpop.permute.xlu1 %1305 }
 0x3a4   : > { %v1310_v24 = vsel %vm608_vm2, %v1304_v28, %v1306_v39 }
 0x3a5   : > { %v1377_v42 = vpack.c.bf16 %v1313_v11, %v1313_v11  ;;  %v1314_v53 = vmul.f32 %v1310_v24, %v3121_v30  ;;  %v1308_v25 = vpop.permute.xlu0 %1307 }
 0x3a6   : > { %v1309_v33 = vsel %vm608_vm2, %v1306_v39, %v1308_v25  ;;  %v1312_v15 = vsel %vm608_vm2, %v1308_v25, %v1302_v0 }
 0x3a7   : > { %v1378_v5 = vpack.c.bf16 %v1314_v53, %v1314_v53  ;;  %v1315_v2 = vmul.f32 %v1309_v33, %v3122_v9  ;;  %v1316_v52 = vmul.f32 %v1312_v15, %v3123_v16  ;;  %v1262_v38 = vpop.permute.xlu1 %1261  ;;  %v1390_v20 = vsel %vm704_vm3, %v1377_v42, 0 }
 0x3a9   : > { %v1379_v46 = vpack.c.bf16 %v1315_v2, %v1315_v2  ;;  %v1380_v58 = vpack.c.bf16 %v1316_v52, %v1316_v52  ;;  %v1264_v22 = vpop.permute.xlu0 %1263  ;;  %1942 = vmatprep.subr.msk.bf16.mxu0 %vm704_vm3, %v1378_v5  ;;  %v3124_v2 = vld [vmem:[#allocation14_spill] sm:$0xff] }
 0x3aa   : > { %1408 = vmatpush1.bf16.msra.mxu0 %v1390_v20  ;;  %v1271_v11 = vsel %vm534_vm5, %v1262_v38, %v1264_v22 }
 0x3ab   : > { %1944 = vmatprep.subr.msk.bf16.mxu1 %vm704_vm3, %v1380_v58  ;;  %v1266_v21 = vpop.permute.xlu1 %1265  ;;  %v1396_v18 = vsel %vm704_vm3, %v1379_v46, 0  ;;  %v1273_v52 = vmul.f32 %v1271_v11, %v3124_v2 }
 0x3ac   : > { %1449 = vmatpush1.bf16.msra.mxu1 %v1396_v18  ;;  %v1270_v28 = vsel %vm534_vm5, %v1264_v22, %v1266_v21 }
 0x3ad   : > { %v1268_v56 = vpop.permute.xlu0 %1267  ;;  %v1274_v33 = vmul.f32 %v1270_v28, %v2271_v32 }
 0x3ae   : > { %v1269_v39 = vsel %vm534_vm5, %v1266_v21, %v1268_v56  ;;  %v1272_v42 = vsel %vm534_vm5, %v1268_v56, %v1262_v38 }
 0x3af   : > { %v1282_v27 = vpop.permute.xlu1 %1281  ;;  %v1275_v46 = vmul.f32 %v1269_v39, %v2276_v43  ;;  %v1276_v22 = vmul.f32 %v1272_v42, %v2268_v31 }
 0x3b1   : > { %v1284_v0 = vpop.permute.xlu0 %1283 }
 0x3b2   : > { %v1291_v23 = vsel %vm571_vm4, %v1282_v27, %v1284_v0 }
 0x3b3   : > { %v1286_v24 = vpop.permute.xlu1 %1285  ;;  %v1293_v53 = vmul.f32 %v1291_v23, %v2281_v47 }
 0x3b4   : > { %v1290_v25 = vsel %vm571_vm4, %v1284_v0, %v1286_v24 }
 0x3b5   : > { %v1294_v15 = vmul.f32 %v1290_v25, %v2289_v50  ;;  %v1288_v5 = vpop.permute.xlu0 %1287  ;;  %v1373_v0 = vpack.c.bf16 %v1293_v53, %v1273_v52  ;;  %v1234_v53 = vmul.f32 %v2688_v54, %v2319_v12  ;;  %v1236_v54 = vmul.f32 %v2699_v3, %v2322_v13 }
 0x3b6   : > { %v1289_v58 = vsel %vm571_vm4, %v1286_v24, %v1288_v5  ;;  %v1292_v38 = vsel %vm571_vm4, %v1288_v5, %v1282_v27  ;;  %v1235_v5 = vmul.f32 %v2694_v55, %v2328_v48 }
 0x3b7   : > { %v1295_v20 = vmul.f32 %v1289_v58, %v2292_v51  ;;  %v1296_v21 = vmul.f32 %v1292_v38, %v2286_v49  ;;  %v1242_v18 = vpop.permute.xlu1 %1241  ;;  %v1374_v56 = vpack.c.bf16 %v1294_v15, %v1274_v33  ;;  %v1233_v15 = vmul.f32 %v2683_v14, %v2325_v19 }
 0x3b9   : > { %v1375_v28 = vpack.c.bf16 %v1295_v20, %v1275_v46  ;;  %v1244_v23 = vpop.permute.xlu0 %1243  ;;  %1409 = vmatprep.subr.bf16.mxu0 %v1374_v56  ;;  %v1376_v11 = vpack.c.bf16 %v1296_v21, %v1276_v22 }
 0x3ba   : > { %v1251_v39 = vsel %vm497_vm6, %v1242_v18, %v1244_v23  ;;  %1410 = vmatpush1.bf16.msra.mxu0 %v1373_v0 }
 0x3bb   : > { %1450 = vmatprep.subr.bf16.mxu1 %v1376_v11  ;;  %v1246_v24 = vpop.permute.xlu1 %1245  ;;  %v1253_v27 = vmul.f32 %v1251_v39, %v2331_v57 }
 0x3bc   : > { %v1250_v42 = vsel %vm497_vm6, %v1244_v23, %v1246_v24  ;;  %1451 = vmatpush1.bf16.msra.mxu1 %v1375_v28 }
 0x3bd   : > { %v1254_v25 = vmul.f32 %v1250_v42, %v2339_v6  ;;  %v1248_v33 = vpop.permute.xlu0 %1247  ;;  %v1369_v21 = vpack.c.bf16 %v1253_v27, %v1233_v15 }
 0x3be   : > { %v1249_v52 = vsel %vm497_vm6, %v1246_v24, %v1248_v33  ;;  %v1252_v46 = vsel %vm497_vm6, %v1248_v33, %v1242_v18 }
 0x3bf   : > { %v1255_v58 = vmul.f32 %v1249_v52, %v2342_v61  ;;  %v1256_v38 = vmul.f32 %v1252_v46, %v2334_v63  ;;  %v1194_v22 = vpop.permute.xlu1 %1193  ;;  %v1370_v20 = vpack.c.bf16 %v1254_v25, %v1234_v53 }
 0x3c1   : > { %v1371_v14 = vpack.c.bf16 %v1255_v58, %v1235_v5  ;;  %v1196_v56 = vpop.permute.xlu0 %1195  ;;  %1411 = vmatprep.subr.bf16.mxu0 %v1370_v20  ;;  %v1372_v55 = vpack.c.bf16 %v1256_v38, %v1236_v54 }
 0x3c2   : > { %1412 = vmatpush1.bf16.msra.mxu0 %v1369_v21  ;;  %v1203_v23 = vsel %vm399_vm7, %v1194_v22, %v1196_v56 }
 0x3c3   : > { %1452 = vmatprep.subr.bf16.mxu1 %v1372_v55  ;;  %v1198_v0 = vpop.permute.xlu1 %1197  ;;  %v1206_v3 = vmul.f32 %v1203_v23, %v2365_v59 }
 0x3c4   : > { %1453 = vmatpush1.bf16.msra.mxu1 %v1371_v14  ;;  %v1202_v53 = vsel %vm399_vm7, %v1196_v56, %v1198_v0 }
 0x3c5   : > { %v1200_v28 = vpop.permute.xlu0 %1199  ;;  %v1207_v14 = vmul.f32 %v1202_v53, %v2378_v8 }
 0x3c6   : > { %v1201_v42 = vsel %vm399_vm7, %v1198_v0, %v1200_v28  ;;  %v1204_v25 = vsel %vm399_vm7, %v1200_v28, %v1194_v22 }
 0x3c7   : > { %v1214_v18 = vpop.permute.xlu1 %1213  ;;  %v1205_v38 = vmul.f32 %v1204_v25, %v2375_v7  ;;  %v1208_v22 = vmul.f32 %v1201_v42, %v2381_v4 }
 0x3c9   : > { %v1216_v11 = vpop.permute.xlu0 %1215 }
 0x3ca   : > { %v1223_v39 = vsel %vm436_vm8, %v1214_v18, %v1216_v11 }
 0x3cb   : > { %v1226_v24 = vmul.f32 %v1223_v39, %v2370_v62  ;;  %v1218_v27 = vpop.permute.xlu1 %1217 }
 0x3cc   : > { %v1222_v33 = vsel %vm436_vm8, %v1216_v11, %v1218_v27 }
 0x3cd   : > { %v1220_v15 = vpop.permute.xlu0 %1219  ;;  %v1366_v5 = vpack.c.bf16 %v1226_v24, %v1206_v3  ;;  %v1227_v52 = vmul.f32 %v1222_v33, %v2393_v40 }
 0x3ce   : > { %v1221_v46 = vsel %vm436_vm8, %v1218_v27, %v1220_v15  ;;  %v1224_v58 = vsel %vm436_vm8, %v1220_v15, %v1214_v18 }
 0x3cf   : > { %v1225_v20 = vmul.f32 %v1224_v58, %v2389_v10  ;;  %v1228_v54 = vmul.f32 %v1221_v46, %v2401_v36  ;;  %v1154_v21 = vpop.permute.xlu1 %1153  ;;  %1413 = vmatprep.subr.bf16.mxu0 %v1366_v5  ;;  %v1367_v28 = vpack.c.bf16 %v1227_v52, %v1207_v14 }
 0x3d1   : > { %v1365_v56 = vpack.c.bf16 %v1225_v20, %v1205_v38  ;;  %v1156_v55 = vpop.permute.xlu0 %1155  ;;  %v1368_v0 = vpack.c.bf16 %v1228_v54, %v1208_v22 }
 0x3d2   : > { %v1163_v39 = vsel %vm325_vm9, %v1154_v21, %v1156_v55 }
 0x3d3   : > { %1454 = vmatprep.subr.bf16.mxu1 %v1368_v0  ;;  %v1158_v23 = vpop.permute.xlu1 %1157  ;;  %1414 = vmatpush1.bf16.msra.mxu0 %v1365_v56  ;;  %v1166_v27 = vmul.f32 %v1163_v39, %v2421_v45 }
 0x3d4   : > { %1455 = vmatpush1.bf16.msra.mxu1 %v1367_v28  ;;  %v1162_v5 = vsel %vm325_vm9, %v1156_v55, %v1158_v23 }
 0x3d5   : > { %v1160_v18 = vpop.permute.xlu0 %1159  ;;  %v1167_v56 = vmul.f32 %v1162_v5, %v2435_v35 }
 0x3d6   : > { %v1161_v33 = vsel %vm325_vm9, %v1158_v23, %v1160_v18  ;;  %v1164_v53 = vsel %vm325_vm9, %v1160_v18, %v1154_v21  ;;  %v1940_v23 = vld [vmem:[%s3076_s2 + $0x8] sm:$0xf] }
 0x3d7   : > { %v1174_v11 = vpop.permute.xlu1 %1173  ;;  %v1165_v20 = vmul.f32 %v1164_v53, %v2431_v1  ;;  %v1168_v54 = vmul.f32 %v1161_v33, %v2439_v60 }
 0x3d9   : > { %v1176_v3 = vpop.permute.xlu0 %1175 }
 0x3da   : > { %v1183_v24 = vsel %vm362_vm10, %v1174_v11, %v1176_v3 }
 0x3db   : > { %v1186_v42 = vmul.f32 %v1183_v24, %v2425_v34  ;;  %v1178_v25 = vpop.permute.xlu1 %1177 }
 0x3dc   : > { %v1182_v15 = vsel %vm362_vm10, %v1176_v3, %v1178_v25 }
 0x3dd   : > { %v1180_v52 = vpop.permute.xlu0 %1179  ;;  %v1362_v46 = vpack.c.bf16 %v1186_v42, %v1166_v27  ;;  %v1187_v58 = vmul.f32 %v1182_v15, %v2449_v26 }
 0x3de   : > { %v1181_v38 = vsel %vm362_vm10, %v1178_v25, %v1180_v52  ;;  %v1184_v22 = vsel %vm362_vm10, %v1180_v52, %v1174_v11 }
 0x3df   : > { %v1185_v21 = vmul.f32 %v1184_v22, %v2446_v41  ;;  %v1188_v14 = vmul.f32 %v1181_v38, %v2456_v37  ;;  %1415 = vmatprep.subr.bf16.mxu0 %v1362_v46  ;;  %v1363_v28 = vpack.c.bf16 %v1187_v58, %v1167_v56  ;;  %v1947_v22 = vld [vmem:[%s3077_s3 + $0x18] sm:$0xff] }
 0x3e1   : > { %v1361_v55 = vpack.c.bf16 %v1185_v21, %v1165_v20  ;;  %v1364_v0 = vpack.c.bf16 %v1188_v14, %v1168_v54 }
 0x3e3   : > { %1416 = vmatpush1.bf16.msra.mxu0 %v1361_v55  ;;  %1456 = vmatprep.subr.bf16.mxu1 %v1364_v0 }
 0x3e4   : > { %1457 = vmatpush1.bf16.msra.mxu1 %v1363_v28 }
 0x3e6   : > { %1943 = vmatmul.mubr.msk.bf16.vlgmr.msra.gmra.mxu0 %vm700_vm11, %v1940_v23 }
 0x3e7   : > { %1945 = vmatmul.mubr.msk.bf16.vlgmr.msra.gmra.mxu1 %vm700_vm11, %v1940_v23  ;;  %1767 = vmatprep.mubr.bf16.mxu0 %v3112_v29 }
 0x3e8   : > { %1808 = vmatprep.mubr.bf16.mxu1 %v3112_v29  ;;  %v1384_v18 = vpop.permute.xlu1 %1383 }
 0x4a6   : > { %v1435_v11 = vpop.f32.mrf.mxu0 }
 0x4a7   : > { %v1436_v39 = vadd.f32 %v1435_v11, %v1384_v18  ;;  %v1476_v3 = vpop.f32.mrf.mxu1 }
 0x4a8   : > { %v1437_v24 = vpop.f32.mrf.mxu0  ;;  %v1477_v42 = vadd.f32 %v1476_v3, %v1384_v18 }
 0x4a9   : > { %v2879_v27 = vmax.f32 %v1436_v39, 0.0  ;;  %v1438_v25 = vadd.f32 %v1437_v24, %v1384_v18  ;;  %v1478_v33 = vpop.f32.mrf.mxu1 }
 0x4aa   : > { %v1439_v53 = vpop.f32.mrf.mxu0  ;;  %v1479_v5 = vadd.f32 %v1478_v33, %v1384_v18  ;;  %v2885_v29 = vmax.f32 %v1477_v42, 0.0 }
 0x4ab   : > { %v2881_v15 = vmax.f32 %v1438_v25, 0.0  ;;  %v1480_v52 = vpop.f32.mrf.mxu1  ;;  %1635 = vrot.lane.b32.xlu0 %v2879_v27, %s2002_s24 }
 0x4ac   : > { %v1440_v46 = vpop.f32.mrf.mxu0  ;;  %v2889_v38 = vmax.f32 %v1479_v5, 0.0 }
 0x4ad   : > { %v1481_v58 = vpop.f32.mrf.mxu1  ;;  %1637 = vrot.lane.b32.xlu1 %v2881_v15, %s2002_s24 }
 0x4af   : > { %1639 = vrot.lane.b32.xlu0 %v2885_v29, %s2002_s24 }
 0x4b1   : > { %1641 = vrot.lane.b32.xlu1 %v2889_v38, %s2002_s24 }
 0x4b3   : > { %1595 = vrot.lane.b32.xlu0 %v2879_v27, %s2003_s25 }
 0x4b5   : > { %1597 = vrot.lane.b32.xlu1 %v2881_v15, %s2003_s25 }
 0x4b7   : > { %1599 = vrot.lane.b32.xlu0 %v2885_v29, %s2003_s25 }
 0x4b9   : > { %1601 = vrot.lane.b32.xlu1 %v2889_v38, %s2003_s25 }
 0x4bb   : > { %1615 = vrot.lane.b32.xlu0 %v2879_v27, %s2004_s26 }
 0x4bd   : > { %1617 = vrot.lane.b32.xlu1 %v2881_v15, %s2004_s26 }
 0x4bf   : > { %1619 = vrot.lane.b32.xlu0 %v2885_v29, %s2004_s26 }
 0x4c1   : > { %1621 = vrot.lane.b32.xlu1 %v2889_v38, %s2004_s26 }
 0x4c3   : > { %1575 = vrot.lane.b32.xlu0 %v2879_v27, %s2005_s27 }
 0x4c5   : > { %1577 = vrot.lane.b32.xlu1 %v2881_v15, %s2005_s27 }
 0x4c7   : > { %1579 = vrot.lane.b32.xlu0 %v2885_v29, %s2005_s27 }
 0x4c9   : > { %1581 = vrot.lane.b32.xlu1 %v2889_v38, %s2005_s27 }
 0x4cb   : > { %1527 = vrot.lane.b32.xlu0 %v2879_v27, %s2006_s28 }
 0x4cd   : > { %1529 = vrot.lane.b32.xlu1 %v2881_v15, %s2006_s28 }
 0x4cf   : > { %1531 = vrot.lane.b32.xlu0 %v2885_v29, %s2006_s28 }
 0x4d1   : > { %1533 = vrot.lane.b32.xlu1 %v2889_v38, %s2006_s28 }
 0x4d3   : > { %1547 = vrot.lane.b32.xlu0 %v2879_v27, %s2007_s29 }
 0x4d5   : > { %1549 = vrot.lane.b32.xlu1 %v2881_v15, %s2007_s29 }
 0x4d7   : > { %1551 = vrot.lane.b32.xlu0 %v2885_v29, %s2007_s29 }
 0x4d9   : > { %1553 = vrot.lane.b32.xlu1 %v2889_v38, %s2007_s29 }
 0x4db   : > { %1487 = vrot.lane.b32.xlu0 %v2879_v27, %s2008_s30 }
 0x4dd   : > { %1489 = vrot.lane.b32.xlu1 %v2881_v15, %s2008_s30 }
 0x4df   : > { %1491 = vrot.lane.b32.xlu0 %v2885_v29, %s2008_s30 }
 0x4e1   : > { %1493 = vrot.lane.b32.xlu1 %v2889_v38, %s2008_s30  ;;  %s237_s30 = scalar_lea.vmem %s3079_s5, %s2052_s20 }
 0x4e3   : > { %1507 = vrot.lane.b32.xlu0 %v2879_v27, %s2010_s6 }
 0x4e5   : > { %1509 = vrot.lane.b32.xlu1 %v2881_v15, %s2010_s6 }
 0x4e7   : > { %1511 = vrot.lane.b32.xlu0 %v2885_v29, %s2010_s6 }
 0x4e9   : > { %1513 = vrot.lane.b32.xlu1 %v2889_v38, %s2010_s6 }
 0x4eb   : > { %1717 = vperm.xlu0 %1975, %v1947_v22  }
 0x51d   : > { %v1636_v20 = vpop.permute.xlu0 %1635 }
 0x51f   : > { %v1638_v54 = vpop.permute.xlu1 %1637 }
 0x520   : > { %v1645_v21 = vsel %vm608_vm2, %v1636_v20, %v1638_v54 }
 0x521   : > { %v1647_v14 = vmul.f32 %v1645_v21, %v3120_v17  ;;  %v1640_v56 = vpop.permute.xlu0 %1639 }
 0x522   : > { %v1644_v55 = vsel %vm608_vm2, %v1638_v54, %v1640_v56 }
 0x523   : > { %v1711_v0 = vpack.c.bf16 %v1647_v14, %v1647_v14  ;;  %v1648_v28 = vmul.f32 %v1644_v55, %v3121_v30  ;;  %v1642_v23 = vpop.permute.xlu1 %1641 }
 0x524   : > { %v1643_v18 = vsel %vm608_vm2, %v1640_v56, %v1642_v23  ;;  %v1646_v11 = vsel %vm608_vm2, %v1642_v23, %v1636_v20 }
 0x525   : > { %v1712_v39 = vpack.c.bf16 %v1648_v28, %v1648_v28  ;;  %v1649_v3 = vmul.f32 %v1643_v18, %v3122_v9  ;;  %v1650_v24 = vmul.f32 %v1646_v11, %v3123_v16  ;;  %v1596_v17 = vpop.permute.xlu0 %1595  ;;  %v1724_v30 = vsel %vm704_vm3, %v1711_v0, 0 }
 0x527   : > { %v1713_v42 = vpack.c.bf16 %v1649_v3, %v1649_v3  ;;  %v1714_v25 = vpack.c.bf16 %v1650_v24, %v1650_v24  ;;  %v1598_v33 = vpop.permute.xlu1 %1597  ;;  %1948 = vmatprep.subr.msk.bf16.mxu0 %vm704_vm3, %v1712_v39 }
 0x528   : > { %1742 = vmatpush1.bf16.msra.mxu0 %v1724_v30  ;;  %v1605_v22 = vsel %vm534_vm5, %v1596_v17, %v1598_v33 }
 0x529   : > { %1950 = vmatprep.subr.msk.bf16.mxu1 %vm704_vm3, %v1714_v25  ;;  %v1600_v53 = vpop.permute.xlu0 %1599  ;;  %v1730_v5 = vsel %vm704_vm3, %v1713_v42, 0  ;;  %v1607_v23 = vmul.f32 %v1605_v22, %v3124_v2 }
 0x52a   : > { %1783 = vmatpush1.bf16.msra.mxu1 %v1730_v5  ;;  %v1604_v16 = vsel %vm534_vm5, %v1598_v33, %v1600_v53  ;;  %v1567_v5 = vmul.f32 %v2879_v27, %v2325_v19 }
 0x52b   : > { %v1602_v52 = vpop.permute.xlu1 %1601  ;;  %v1608_v55 = vmul.f32 %v1604_v16, %v2271_v32 }
 0x52c   : > { %v1603_v20 = vsel %vm534_vm5, %v1600_v53, %v1602_v52  ;;  %v1606_v21 = vsel %vm534_vm5, %v1602_v52, %v1596_v17  ;;  %v1568_v53 = vmul.f32 %v2881_v15, %v2319_v12  ;;  %v1569_v52 = vmul.f32 %v2885_v29, %v2328_v48 }
 0x52d   : > { %v1616_v46 = vpop.permute.xlu0 %1615  ;;  %v1609_v18 = vmul.f32 %v1603_v20, %v2276_v43  ;;  %v1570_v12 = vmul.f32 %v2889_v38, %v2322_v13 }
 0x52f   : > { %v1618_v9 = vpop.permute.xlu1 %1617 }
 0x530   : > { %v1625_v58 = vsel %vm571_vm4, %v1616_v46, %v1618_v9 }
 0x531   : > { %v1620_v54 = vpop.permute.xlu0 %1619  ;;  %v1627_v14 = vmul.f32 %v1625_v58, %v2281_v47  ;;  %v1610_v47 = vmul.f32 %v1606_v21, %v2268_v31 }
 0x532   : > { %v1624_v56 = vsel %vm571_vm4, %v1618_v9, %v1620_v54 }
 0x533   : > { %v1628_v0 = vmul.f32 %v1624_v56, %v2289_v50  ;;  %v1622_v28 = vpop.permute.xlu1 %1621  ;;  %v1707_v50 = vpack.c.bf16 %v1627_v14, %v1607_v23 }
 0x534   : > { %v1623_v11 = vsel %vm571_vm4, %v1620_v54, %v1622_v28  ;;  %v1626_v39 = vsel %vm571_vm4, %v1622_v28, %v1616_v46 }
 0x535   : > { %v1629_v3 = vmul.f32 %v1623_v11, %v2292_v51  ;;  %v1630_v24 = vmul.f32 %v1626_v39, %v2286_v49  ;;  %v1576_v32 = vpop.permute.xlu0 %1575  ;;  %v1708_v17 = vpack.c.bf16 %v1628_v0, %v1608_v55 }
 0x537   : > { %v1709_v42 = vpack.c.bf16 %v1629_v3, %v1609_v18  ;;  %v1578_v25 = vpop.permute.xlu1 %1577  ;;  %1743 = vmatprep.subr.bf16.mxu0 %v1708_v17  ;;  %v1710_v2 = vpack.c.bf16 %v1630_v24, %v1610_v47 }
 0x538   : > { %v1585_v43 = vsel %vm497_vm6, %v1576_v32, %v1578_v25  ;;  %1744 = vmatpush1.bf16.msra.mxu0 %v1707_v50 }
 0x539   : > { %1784 = vmatprep.subr.bf16.mxu1 %v1710_v2  ;;  %v1580_v33 = vpop.permute.xlu0 %1579  ;;  %v1587_v30 = vmul.f32 %v1585_v43, %v2331_v57 }
 0x53a   : > { %v1584_v31 = vsel %vm497_vm6, %v1578_v25, %v1580_v33  ;;  %1785 = vmatpush1.bf16.msra.mxu1 %v1709_v42 }
 0x53b   : > { %v1588_v49 = vmul.f32 %v1584_v31, %v2339_v6  ;;  %v1582_v51 = vpop.permute.xlu1 %1581  ;;  %v1703_v15 = vpack.c.bf16 %v1587_v30, %v1567_v5 }
 0x53c   : > { %v1583_v46 = vsel %vm497_vm6, %v1580_v33, %v1582_v51  ;;  %v1586_v57 = vsel %vm497_vm6, %v1582_v51, %v1576_v32 }
 0x53d   : > { %v1589_v9 = vmul.f32 %v1583_v46, %v2342_v61  ;;  %v1590_v6 = vmul.f32 %v1586_v57, %v2334_v63  ;;  %v1528_v16 = vpop.permute.xlu0 %1527  ;;  %v1704_v58 = vpack.c.bf16 %v1588_v49, %v1568_v53 }
 0x53f   : > { %v1705_v19 = vpack.c.bf16 %v1589_v9, %v1569_v52  ;;  %v1530_v27 = vpop.permute.xlu1 %1529  ;;  %1745 = vmatprep.subr.bf16.mxu0 %v1704_v58  ;;  %v1706_v48 = vpack.c.bf16 %v1590_v6, %v1570_v12 }
 0x540   : > { %1746 = vmatpush1.bf16.msra.mxu0 %v1703_v15  ;;  %v1537_v61 = vsel %vm399_vm7, %v1528_v16, %v1530_v27 }
 0x541   : > { %1786 = vmatprep.subr.bf16.mxu1 %v1706_v48  ;;  %v1532_v29 = vpop.permute.xlu0 %1531  ;;  %v1540_v13 = vmul.f32 %v1537_v61, %v2365_v59 }
 0x542   : > { %1787 = vmatpush1.bf16.msra.mxu1 %v1705_v19  ;;  %v1536_v0 = vsel %vm399_vm7, %v1530_v27, %v1532_v29 }
 0x543   : > { %v1534_v22 = vpop.permute.xlu1 %1533  ;;  %v1541_v32 = vmul.f32 %v1536_v0, %v2378_v8 }
 0x544   : > { %v1535_v14 = vsel %vm399_vm7, %v1532_v29, %v1534_v22  ;;  %v1538_v56 = vsel %vm399_vm7, %v1534_v22, %v1528_v16 }
 0x545   : > { %v1548_v20 = vpop.permute.xlu0 %1547  ;;  %v1539_v11 = vmul.f32 %v1538_v56, %v2375_v7  ;;  %v1542_v39 = vmul.f32 %v1535_v14, %v2381_v4 }
 0x547   : > { %v1550_v63 = vpop.permute.xlu1 %1549 }
 0x548   : > { %v1557_v54 = vsel %vm436_vm8, %v1548_v20, %v1550_v63 }
 0x549   : > { %v1560_v38 = vmul.f32 %v1557_v54, %v2370_v62  ;;  %v1552_v21 = vpop.permute.xlu0 %1551 }
 0x54a   : > { %v1556_v55 = vsel %vm436_vm8, %v1550_v63, %v1552_v21 }
 0x54b   : > { %v1554_v28 = vpop.permute.xlu1 %1553  ;;  %v1700_v23 = vpack.c.bf16 %v1560_v38, %v1540_v13  ;;  %v1561_v18 = vmul.f32 %v1556_v55, %v2393_v40 }
 0x54c   : > { %v1555_v59 = vsel %vm436_vm8, %v1552_v21, %v1554_v28  ;;  %v1558_v62 = vsel %vm436_vm8, %v1554_v28, %v1548_v20 }
 0x54d   : > { %v1559_v47 = vmul.f32 %v1558_v62, %v2389_v10  ;;  %v1562_v3 = vmul.f32 %v1555_v59, %v2401_v36  ;;  %v1488_v24 = vpop.permute.xlu0 %1487  ;;  %1747 = vmatprep.subr.bf16.mxu0 %v1700_v23  ;;  %v1701_v42 = vpack.c.bf16 %v1561_v18, %v1541_v32 }
 0x54f   : > { %v1699_v17 = vpack.c.bf16 %v1559_v47, %v1539_v11  ;;  %v1490_v40 = vpop.permute.xlu1 %1489  ;;  %v1702_v50 = vpack.c.bf16 %v1562_v3, %v1542_v39 }
 0x550   : > { %v1497_v4 = vsel %vm325_vm9, %v1488_v24, %v1490_v40 }
 0x551   : > { %1788 = vmatprep.subr.bf16.mxu1 %v1702_v50  ;;  %v1492_v25 = vpop.permute.xlu0 %1491  ;;  %1748 = vmatpush1.bf16.msra.mxu0 %v1699_v17  ;;  %v1500_v43 = vmul.f32 %v1497_v4, %v2421_v45 }
 0x552   : > { %1789 = vmatpush1.bf16.msra.mxu1 %v1701_v42  ;;  %v1496_v51 = vsel %vm325_vm9, %v1490_v40, %v1492_v25 }
 0x553   : > { %v1494_v2 = vpop.permute.xlu1 %1493  ;;  %v1501_v16 = vmul.f32 %v1496_v51, %v2435_v35 }
 0x554   : > { %v1495_v30 = vsel %vm325_vm9, %v1492_v25, %v1494_v2  ;;  %v1498_v31 = vsel %vm325_vm9, %v1494_v2, %v1488_v24 }
 0x555   : > { %v1508_v7 = vpop.permute.xlu0 %1507  ;;  %v1499_v46 = vmul.f32 %v1498_v31, %v2431_v1  ;;  %v1502_v57 = vmul.f32 %v1495_v30, %v2439_v60 }
 0x557   : > { %v1510_v10 = vpop.permute.xlu1 %1509 }
 0x558   : > { %v1517_v36 = vsel %vm362_vm10, %v1508_v7, %v1510_v10 }
 0x559   : > { %v1520_v8 = vmul.f32 %v1517_v36, %v2425_v34  ;;  %v1512_v33 = vpop.permute.xlu0 %1511 }
 0x55a   : > { %v1516_v49 = vsel %vm362_vm10, %v1510_v10, %v1512_v33 }
 0x55b   : > { %v1514_v53 = vpop.permute.xlu1 %1513  ;;  %v1696_v5 = vpack.c.bf16 %v1520_v8, %v1500_v43  ;;  %v1521_v52 = vmul.f32 %v1516_v49, %v2449_v26 }
 0x55c   : > { %v1515_v45 = vsel %vm362_vm10, %v1512_v33, %v1514_v53  ;;  %v1518_v34 = vsel %vm362_vm10, %v1514_v53, %v1508_v7 }
 0x55d   : > { %v1519_v9 = vmul.f32 %v1518_v34, %v2446_v41  ;;  %v1522_v6 = vmul.f32 %v1515_v45, %v2456_v37  ;;  %1749 = vmatprep.subr.bf16.mxu0 %v1696_v5  ;;  %v1697_v26 = vpack.c.bf16 %v1521_v52, %v1501_v16 }
 0x55f   : > { %v1695_v58 = vpack.c.bf16 %v1519_v9, %v1499_v46  ;;  %v1698_v12 = vpack.c.bf16 %v1522_v6, %v1502_v57 }
 0x561   : > { %1750 = vmatpush1.bf16.msra.mxu0 %v1695_v58  ;;  %1790 = vmatprep.subr.bf16.mxu1 %v1698_v12 }
 0x562   : > { %1791 = vmatpush1.bf16.msra.mxu1 %v1697_v26 }
 0x564   : > { %1949 = vmatmul.mubr.msk.bf16.vlgmr.msra.gmra.mxu0 %vm700_vm11, %v1946_v44 }
 0x565   : > { %1951 = vmatmul.mubr.msk.bf16.vlgmr.msra.gmra.mxu1 %vm700_vm11, %v1946_v44 }
 0x566   : > { %v1718_v1 = vpop.permute.xlu0 %1717 }
 0x624   : > { %v1769_v60 = vpop.f32.mrf.mxu0 }
 0x625   : > { %v1770_v41 = vadd.f32 %v1769_v60, %v1718_v1  ;;  %v1810_v37 = vpop.f32.mrf.mxu1 }
 0x626   : > { %v1811_v35 = vadd.f32 %v1810_v37, %v1718_v1  ;;  %v1771_v15 = vpop.f32.mrf.mxu0 }
 0x627   : > { %1985 = vtanh.f32 %v1770_v41  ;;  %v1772_v19 = vadd.f32 %v1771_v15, %v1718_v1  ;;  %v1812_v27 = vpop.f32.mrf.mxu1 }
 0x628   : > { %1987 = vtanh.f32 %v1811_v35  ;;  %v1813_v48 = vadd.f32 %v1812_v27, %v1718_v1  ;;  %v1773_v29 = vpop.f32.mrf.mxu0 }
 0x629   : > { %1989 = vtanh.f32 %v1772_v19  ;;  %v1814_v22 = vpop.f32.mrf.mxu1 }
 0x62a   : > { %1991 = vtanh.f32 %v1813_v48  ;;  %v1774_v20 = vpop.f32.mrf.mxu0 }
 0x62b   : > { %v1815_v61 = vpop.f32.mrf.mxu1 }
 0x634   : > { %v1986_v63 = vpop.eup %1985 }
 0x635   : > { %v1988_v54 = vpop.eup %1987  ;;  %1825 = vst [vmem:[%s237_s30] sm:$0xff] %v1986_v63 }
 0x636   : > { %v1990_v13 = vpop.eup %1989  ;;  %1827 = vst [vmem:[%s237_s30 + $0x10] sm:$0xff] %v1988_v54 }
 0x637   : > { %v1992_v38 = vpop.eup %1991  ;;  %1826 = vst [vmem:[%s237_s30 + $0x8] sm:$0xff] %v1990_v13 }
 0x638   : > { %1828 = vst [vmem:[%s237_s30 + $0x18] sm:$0xff] %v1992_v38 }
 0x639 PF: > { %s16_s18 = sadd.s32 1, %s1999_s18  }
 0x63a   : > { %p13_p4 = scmp.ge.s32.totalorder %s16_s18, 4  }
 0x63c   :  { %15 = sbr.rel (!%p13_p4) target bundleno = 1 (0x1), region = 84 }

</bundles_post_ra>
